<compile_context>
chip_gen: v6e
topology: v6e:2x2x1
jax: 0.10.0
libtpu: 0.0.40
codegen_flags: <defaults>
</compile_context>

<pallas_src>
import jax
import jax.numpy as jnp
from jax import lax
from jax.experimental import pallas as pl
from jax.experimental.pallas import tpu as pltpu


def dwconv3x3_kernel(x_ref, w_ref, b_ref, o_ref):
    """One (batch-tile, channel-tile, row-tile) step.

    x_ref: (TB, TH+2, WIN, TC)  zero-padded input window (input dtype)
    w_ref: (3, 3, TC)           depthwise taps, channels on lanes (float32)
    b_ref: (1, TC)              bias (float32)
    o_ref: (TB, TH, WOUT, TC)   output tile (input dtype)
    """
    TB, TH, WOUT, TC = o_ref.shape
    del TB, TC  # only TH / WOUT are needed for slicing

    w = w_ref[...].astype(jnp.float32)            # (3, 3, TC), tiny
    b = b_ref[...].astype(jnp.float32)            # (1, TC)

    acc = None
    for dh in range(3):
        # One f32 cast per dh band (3 total) instead of one per tap (9 total).
        band = x_ref[:, dh:dh + TH, :, :].astype(jnp.float32)   # (TB, TH, WIN, TC)
        for dw in range(3):
            # dw shifts are static sublane slices; multiply + accumulate in f32.
            tap = band[:, :, dw:dw + WOUT, :] * w[dh, dw]
            acc = tap if acc is None else acc + tap

    # (1, TC) bias broadcasts over (TB, TH, WOUT, TC); no explicit broadcast_to.
    o_ref[...] = (acc + b).astype(o_ref.dtype)


def _target_block_bytes():
    """Per-generation per-step block-byte target (in + out block)."""
    kind = ""
    try:
        kind = jax.devices()[0].device_kind.lower()
    except Exception:
        pass
    if "v2" in kind or "v3" in kind:
        return 1 * 1024 * 1024
    if "v5 lite" in kind or "v5e" in kind or "v5lite" in kind:
        return 2 * 1024 * 1024           # 16 MiB default scoped VMEM, 0.82 TB/s
    return 4 * 1024 * 1024               # v6e/v7x: amortize 0.35 us/step overhead


def _choose_tiles(B, Hp, Wout, Win, Cp, itemsize, target):
    """Pick (batch tile, row tile, channel tile)."""

    def blk_bytes(tb, th, tc):
        return tb * ((th + 2) * Win + th * Wout) * tc * itemsize

    # Guarantee a decent row tile (halo re-read is 2/TH) before maximizing TC.
    th_min = min(Hp, 16)

    # Channel tile: prefer TC == Cp (fully contiguous DMA rows); shrink in
    # steps of 128 only if even a th_min-row block would blow the budget.
    tc = 128
    for cand in range(Cp, 127, -128):
        if Cp % cand == 0 and blk_bytes(1, th_min, cand) <= target:
            tc = cand
            break

    # Row tile: largest divisor of Hp under the budget; Hp is a multiple of 8
    # so TH = 8 always exists as a floor (never the TH = 1 pathology).
    th = min(Hp, 8)
    for d in range(1, Hp + 1):
        if Hp % d == 0 and d >= th and blk_bytes(1, d, tc) <= target:
            th = d

    nh = Hp // th
    nc = Cp // tc

    # Batch tile: grow toward the target for small-spatial stages, but keep
    # at least 2 grid steps so the pipeline has something to overlap.
    tb = 1
    for d in range(1, B + 1):
        if B % d == 0 and blk_bytes(d, th, tc) <= target and (B // d) * nc * nh >= 2:
            tb = d
    return tb, th, tc


def dwconv(x_nchw, weight, bias, *, target_block_bytes=None,
           batch_tile=None, row_tile=None, channel_tile=None):
    """x_nchw: (B, C, H, W); weight: (C, 1, 3, 3) (PyTorch depthwise); bias: (C,)."""
    B, C, H, W = x_nchw.shape
    dt = x_nchw.dtype
    itemsize = jnp.dtype(dt).itemsize

    Cp = max(128, ((C + 127) // 128) * 128)     # lane-dense channel count
    Hp = ((H + 7) // 8) * 8                     # row count with a clean tiling
    Wout = ((W + 7) // 8) * 8                   # 8-aligned output sublane dim
    Win = Wout + 8                              # 8-aligned input sublane dim (>= Wout+2)

    # --- glue: NCHW -> NHWC, then ONE pad (halo + alignment + lane pad) ---
    x_nhwc = jnp.transpose(x_nchw, (0, 2, 3, 1))                       # (B, H, W, C)
    x_pad = jnp.pad(x_nhwc, ((0, 0),
                             (1, Hp + 1 - H),
                             (1, Win - 1 - W),
                             (0, Cp - C)))                             # (B, Hp+2, Win, Cp)

    # Weights/bias are tiny: keep them in f32 (better numerics for bf16 inputs).
    w_hwc = jnp.transpose(weight[:, 0, :, :], (1, 2, 0)).astype(jnp.float32)
    w_hwc = jnp.pad(w_hwc, ((0, 0), (0, 0), (0, Cp - C)))              # (3, 3, Cp)
    b_1c = jnp.pad(bias.astype(jnp.float32), (0, Cp - C)).reshape(1, Cp)

    target = target_block_bytes if target_block_bytes else _target_block_bytes()
    tb, th, tc = _choose_tiles(B, Hp, Wout, Win, Cp, itemsize, target)
    if batch_tile is not None:
        tb = batch_tile
    if row_tile is not None:
        th = row_tile
    if channel_tile is not None:
        tc = channel_tile
    assert B % tb == 0 and Hp % th == 0 and Cp % tc == 0

    nb, nc, nh = B // tb, Cp // tc, Hp // th

    # Explicit scoped-VMEM budget: double-buffered in/out blocks + f32
    # temporaries (acc, tap, one f32 band) + headroom.
    in_blk = tb * (th + 2) * Win * tc * itemsize
    out_blk = tb * th * Wout * tc * itemsize
    f32_tmp = (2 * (out_blk // itemsize) + (in_blk // itemsize)) * 4
    vmem_limit = int(min(56 << 20, max(24 << 20,
                                       2 * (in_blk + out_blk) + f32_tmp + (2 << 20))))

    flops = 2 * 9 * B * Hp * Wout * Cp
    bytes_in = B * ((Hp + 2) + 2 * (nh - 1)) * Win * Cp * itemsize      # incl. halo re-read
    bytes_out = B * Hp * Wout * Cp * itemsize
    cost = pl.CostEstimate(flops=int(flops), transcendentals=0,
                           bytes_accessed=int(bytes_in + bytes_out
                                              + w_hwc.size * 4 + b_1c.size * 4))

    if nh == 1:
        # Whole (padded) row range in one blocked window.
        x_spec = pl.BlockSpec((tb, Hp + 2, Win, tc), lambda b, c, h: (b, 0, 0, c))
    else:
        # Overlapping (TH+2)-row windows: element offsets along H provide the
        # 2-row halo; offsets h*TH lie in [0, Hp - TH], so the window always
        # stays inside the padded array.
        x_spec = pl.BlockSpec((tb, pl.Element(th + 2), Win, tc),
                              lambda b, c, h: (b, h * th, 0, c))

    out_nhwc = pl.pallas_call(
        dwconv3x3_kernel,
        out_shape=jax.ShapeDtypeStruct((B, Hp, Wout, Cp), dt),
        grid_spec=pltpu.PrefetchScalarGridSpec(
            num_scalar_prefetch=0,
            grid=(nb, nc, nh),
            in_specs=[
                x_spec,
                pl.BlockSpec((3, 3, tc), lambda b, c, h: (0, 0, c)),
                pl.BlockSpec((1, tc), lambda b, c, h: (0, c)),
            ],
            out_specs=pl.BlockSpec((tb, th, Wout, tc), lambda b, c, h: (b, h, 0, c)),
        ),
        # Depthwise conv has no cross-step dependence: every grid axis is
        # independent, so all can be sharded across TensorCores.
        compiler_params=pltpu.CompilerParams(
            dimension_semantics=("parallel", "parallel", "parallel"),
            vmem_limit_bytes=vmem_limit),
        cost_estimate=cost,
    )(x_pad, w_hwc, b_1c)

    out = out_nhwc[:, :H, :W, :C]
    return jnp.transpose(out, (0, 3, 1, 2))                            # back to NCHW


class DWConv:
    """Mirror of the PyTorch module: nn.Conv2d(dim, dim, 3, 1, 1, bias=True, groups=dim)."""

    def __init__(self, dim=768, key=jax.random.PRNGKey(0)):
        kw, kb = jax.random.split(key)
        fan_in = 1 * 3 * 3  # groups=dim => in_channels/groups = 1
        bound = 1.0 / (fan_in ** 0.5)
        self.weight = jax.random.uniform(kw, (dim, 1, 3, 3), jnp.float32, -bound, bound)
        self.bias = jax.random.uniform(kb, (dim,), jnp.float32, -bound, bound)

    def __call__(self, x, H, W):
        # H, W kept for API fidelity with the PyTorch forward (unused there too).
        return dwconv(x, self.weight, self.bias)


def _ref_dwconv(x, weight, bias):
    C = x.shape[1]
    out = lax.conv_general_dilated(
        x, weight, window_strides=(1, 1), padding=((1, 1), (1, 1)),
        dimension_numbers=("NCHW", "OIHW", "NCHW"), feature_group_count=C,
        precision=lax.Precision.HIGHEST)
    return out + bias.reshape(1, C, 1, 1)


if __name__ == "__main__":
    key = jax.random.PRNGKey(0)

    # ---- test 1: module-default small case (f32, single row tile) ----
    B, C, H, W = 2, 4, 16, 16
    kx, kp, k2x, k2w, k2b, k3x = jax.random.split(key, 6)
    x = jax.random.normal(kx, (B, C, H, W), jnp.float32)
    mod = DWConv(dim=C, key=kp)
    out = jax.block_until_ready(mod(x, H, W))
    ref = _ref_dwconv(x, mod.weight, mod.bias)
    assert out.shape == (B, C, H, W)
    assert jnp.allclose(out, ref, atol=1e-5, rtol=1e-5)

    # ---- test 2: forced multi-tile case exercising the overlapping-window
    # (pl.Element halo) path, channel tiling, batch tiling and W padding ----
    B2, C2, H2, W2 = 2, 256, 24, 20
    x2 = jax.random.normal(k2x, (B2, C2, H2, W2), jnp.float32)
    w2 = jax.random.uniform(k2w, (C2, 1, 3, 3), jnp.float32, -1.0 / 3, 1.0 / 3)
    b2 = jax.random.uniform(k2b, (C2,), jnp.float32, -1.0 / 3, 1.0 / 3)
    out2 = jax.block_until_ready(
        dwconv(x2, w2, b2, row_tile=8, channel_tile=128, batch_tile=2))
    ref2 = _ref_dwconv(x2, w2, b2)
    assert out2.shape == (B2, C2, H2, W2)
    assert jnp.allclose(out2, ref2, atol=1e-5, rtol=1e-5)

    # ---- test 3: bf16 activations (per-band f32 upcast path) ----
    x3 = jax.random.normal(k3x, (B, C, H, W), jnp.float32).astype(jnp.bfloat16)
    out3 = jax.block_until_ready(dwconv(x3, mod.weight, mod.bias))
    ref3 = _ref_dwconv(x3.astype(jnp.float32), mod.weight, mod.bias)
    assert out3.dtype == jnp.bfloat16
    assert jnp.allclose(out3.astype(jnp.float32), ref3, atol=5e-2, rtol=2e-2)

    print("KERNEL_OK")
</pallas_src>

<mosaic_0001>
module attributes {stable_mosaic.version = 11 : i64} {
  func.func @dwconv3x3_kernel(%arg0: i32, %arg1: i32, %arg2: i32, %arg3: memref<1x18x24x128xf32, #tpu.memory_space<vmem>>, %arg4: memref<3x3x128xf32, #tpu.memory_space<vmem>>, %arg5: memref<1x128xf32, #tpu.memory_space<vmem>>, %arg6: memref<1x16x16x128xf32, #tpu.memory_space<vmem>>) attributes {dimension_semantics = [#tpu.dimension_semantics<parallel>, #tpu.dimension_semantics<parallel>, #tpu.dimension_semantics<parallel>], iteration_bounds = array<i64: 2, 1, 1>, scalar_prefetch = 0 : i64, scratch_operands = 0 : i64, tpu.core_type = #tpu.core_type<tc>, window_params = [{transform_indices = @transform_0, window_bounds = array<i64: 1, 18, 24, 128>}, {transform_indices = @transform_1, window_bounds = array<i64: 3, 3, 128>}, {transform_indices = @transform_2, window_bounds = array<i64: 1, 128>}, {transform_indices = @transform_3, window_bounds = array<i64: 1, 16, 16, 128>}]} {
    %c0 = arith.constant 0 : index
    %c0_0 = arith.constant 0 : index
    %c0_1 = arith.constant 0 : index
    %0 = vector.load %arg4[%c0, %c0_0, %c0_1] : memref<3x3x128xf32, #tpu.memory_space<vmem>>, vector<3x3x128xf32>
    %c0_2 = arith.constant 0 : index
    %c0_3 = arith.constant 0 : index
    %1 = vector.load %arg5[%c0_2, %c0_3] : memref<1x128xf32, #tpu.memory_space<vmem>>, vector<1x128xf32>
    %c0_4 = arith.constant 0 : index
    %c0_5 = arith.constant 0 : index
    %c0_6 = arith.constant 0 : index
    %c0_7 = arith.constant 0 : index
    %2 = vector.load %arg3[%c0_4, %c0_5, %c0_6, %c0_7] : memref<1x18x24x128xf32, #tpu.memory_space<vmem>>, vector<1x16x24x128xf32>
    %3 = vector.extract_strided_slice %2 {offsets = [0, 0, 0, 0], sizes = [1, 16, 16, 128], strides = [1, 1, 1, 1]} : vector<1x16x24x128xf32> to vector<1x16x16x128xf32>
    %4 = vector.extract_strided_slice %0 {offsets = [0, 0, 0], sizes = [1, 1, 128], strides = [1, 1, 1]} : vector<3x3x128xf32> to vector<1x1x128xf32>
    %5 = vector.shape_cast %4 : vector<1x1x128xf32> to vector<128xf32>
    %6 = vector.shape_cast %5 : vector<128xf32> to vector<1x1x1x128xf32>
    %7 = vector.broadcast %6 : vector<1x1x1x128xf32> to vector<1x16x16x128xf32>
    %8 = arith.mulf %3, %7 : vector<1x16x16x128xf32>
    %9 = vector.extract_strided_slice %2 {offsets = [0, 0, 1, 0], sizes = [1, 16, 16, 128], strides = [1, 1, 1, 1]} : vector<1x16x24x128xf32> to vector<1x16x16x128xf32>
    %10 = vector.extract_strided_slice %0 {offsets = [0, 1, 0], sizes = [1, 1, 128], strides = [1, 1, 1]} : vector<3x3x128xf32> to vector<1x1x128xf32>
    %11 = vector.shape_cast %10 : vector<1x1x128xf32> to vector<128xf32>
    %12 = vector.shape_cast %11 : vector<128xf32> to vector<1x1x1x128xf32>
    %13 = vector.broadcast %12 : vector<1x1x1x128xf32> to vector<1x16x16x128xf32>
    %14 = arith.mulf %9, %13 : vector<1x16x16x128xf32>
    %15 = arith.addf %8, %14 : vector<1x16x16x128xf32>
    %16 = vector.extract_strided_slice %2 {offsets = [0, 0, 2, 0], sizes = [1, 16, 16, 128], strides = [1, 1, 1, 1]} : vector<1x16x24x128xf32> to vector<1x16x16x128xf32>
    %17 = vector.extract_strided_slice %0 {offsets = [0, 2, 0], sizes = [1, 1, 128], strides = [1, 1, 1]} : vector<3x3x128xf32> to vector<1x1x128xf32>
    %18 = vector.shape_cast %17 : vector<1x1x128xf32> to vector<128xf32>
    %19 = vector.shape_cast %18 : vector<128xf32> to vector<1x1x1x128xf32>
    %20 = vector.broadcast %19 : vector<1x1x1x128xf32> to vector<1x16x16x128xf32>
    %21 = arith.mulf %16, %20 : vector<1x16x16x128xf32>
    %22 = arith.addf %15, %21 : vector<1x16x16x128xf32>
    %c0_8 = arith.constant 0 : index
    %c1 = arith.constant 1 : index
    %c0_9 = arith.constant 0 : index
    %c0_10 = arith.constant 0 : index
    %23 = vector.load %arg3[%c0_8, %c1, %c0_9, %c0_10] : memref<1x18x24x128xf32, #tpu.memory_space<vmem>>, vector<1x16x24x128xf32>
    %24 = vector.extract_strided_slice %23 {offsets = [0, 0, 0, 0], sizes = [1, 16, 16, 128], strides = [1, 1, 1, 1]} : vector<1x16x24x128xf32> to vector<1x16x16x128xf32>
    %25 = vector.extract_strided_slice %0 {offsets = [1, 0, 0], sizes = [1, 1, 128], strides = [1, 1, 1]} : vector<3x3x128xf32> to vector<1x1x128xf32>
    %26 = vector.shape_cast %25 : vector<1x1x128xf32> to vector<128xf32>
    %27 = vector.shape_cast %26 : vector<128xf32> to vector<1x1x1x128xf32>
    %28 = vector.broadcast %27 : vector<1x1x1x128xf32> to vector<1x16x16x128xf32>
    %29 = arith.mulf %24, %28 : vector<1x16x16x128xf32>
    %30 = arith.addf %22, %29 : vector<1x16x16x128xf32>
    %31 = vector.extract_strided_slice %23 {offsets = [0, 0, 1, 0], sizes = [1, 16, 16, 128], strides = [1, 1, 1, 1]} : vector<1x16x24x128xf32> to vector<1x16x16x128xf32>
    %32 = vector.extract_strided_slice %0 {offsets = [1, 1, 0], sizes = [1, 1, 128], strides = [1, 1, 1]} : vector<3x3x128xf32> to vector<1x1x128xf32>
    %33 = vector.shape_cast %32 : vector<1x1x128xf32> to vector<128xf32>
    %34 = vector.shape_cast %33 : vector<128xf32> to vector<1x1x1x128xf32>
    %35 = vector.broadcast %34 : vector<1x1x1x128xf32> to vector<1x16x16x128xf32>
    %36 = arith.mulf %31, %35 : vector<1x16x16x128xf32>
    %37 = arith.addf %30, %36 : vector<1x16x16x128xf32>
    %38 = vector.extract_strided_slice %23 {offsets = [0, 0, 2, 0], sizes = [1, 16, 16, 128], strides = [1, 1, 1, 1]} : vector<1x16x24x128xf32> to vector<1x16x16x128xf32>
    %39 = vector.extract_strided_slice %0 {offsets = [1, 2, 0], sizes = [1, 1, 128], strides = [1, 1, 1]} : vector<3x3x128xf32> to vector<1x1x128xf32>
    %40 = vector.shape_cast %39 : vector<1x1x128xf32> to vector<128xf32>
    %41 = vector.shape_cast %40 : vector<128xf32> to vector<1x1x1x128xf32>
    %42 = vector.broadcast %41 : vector<1x1x1x128xf32> to vector<1x16x16x128xf32>
    %43 = arith.mulf %38, %42 : vector<1x16x16x128xf32>
    %44 = arith.addf %37, %43 : vector<1x16x16x128xf32>
    %c0_11 = arith.constant 0 : index
    %c2 = arith.constant 2 : index
    %c0_12 = arith.constant 0 : index
    %c0_13 = arith.constant 0 : index
    %45 = vector.load %arg3[%c0_11, %c2, %c0_12, %c0_13] : memref<1x18x24x128xf32, #tpu.memory_space<vmem>>, vector<1x16x24x128xf32>
    %46 = vector.extract_strided_slice %45 {offsets = [0, 0, 0, 0], sizes = [1, 16, 16, 128], strides = [1, 1, 1, 1]} : vector<1x16x24x128xf32> to vector<1x16x16x128xf32>
    %47 = vector.extract_strided_slice %0 {offsets = [2, 0, 0], sizes = [1, 1, 128], strides = [1, 1, 1]} : vector<3x3x128xf32> to vector<1x1x128xf32>
    %48 = vector.shape_cast %47 : vector<1x1x128xf32> to vector<128xf32>
    %49 = vector.shape_cast %48 : vector<128xf32> to vector<1x1x1x128xf32>
    %50 = vector.broadcast %49 : vector<1x1x1x128xf32> to vector<1x16x16x128xf32>
    %51 = arith.mulf %46, %50 : vector<1x16x16x128xf32>
    %52 = arith.addf %44, %51 : vector<1x16x16x128xf32>
    %53 = vector.extract_strided_slice %45 {offsets = [0, 0, 1, 0], sizes = [1, 16, 16, 128], strides = [1, 1, 1, 1]} : vector<1x16x24x128xf32> to vector<1x16x16x128xf32>
    %54 = vector.extract_strided_slice %0 {offsets = [2, 1, 0], sizes = [1, 1, 128], strides = [1, 1, 1]} : vector<3x3x128xf32> to vector<1x1x128xf32>
    %55 = vector.shape_cast %54 : vector<1x1x128xf32> to vector<128xf32>
    %56 = vector.shape_cast %55 : vector<128xf32> to vector<1x1x1x128xf32>
    %57 = vector.broadcast %56 : vector<1x1x1x128xf32> to vector<1x16x16x128xf32>
    %58 = arith.mulf %53, %57 : vector<1x16x16x128xf32>
    %59 = arith.addf %52, %58 : vector<1x16x16x128xf32>
    %60 = vector.extract_strided_slice %45 {offsets = [0, 0, 2, 0], sizes = [1, 16, 16, 128], strides = [1, 1, 1, 1]} : vector<1x16x24x128xf32> to vector<1x16x16x128xf32>
    %61 = vector.extract_strided_slice %0 {offsets = [2, 2, 0], sizes = [1, 1, 128], strides = [1, 1, 1]} : vector<3x3x128xf32> to vector<1x1x128xf32>
    %62 = vector.shape_cast %61 : vector<1x1x128xf32> to vector<128xf32>
    %63 = vector.shape_cast %62 : vector<128xf32> to vector<1x1x1x128xf32>
    %64 = vector.broadcast %63 : vector<1x1x1x128xf32> to vector<1x16x16x128xf32>
    %65 = arith.mulf %60, %64 : vector<1x16x16x128xf32>
    %66 = arith.addf %59, %65 : vector<1x16x16x128xf32>
    %67 = vector.shape_cast %1 : vector<1x128xf32> to vector<1x1x1x128xf32>
    %68 = vector.broadcast %67 : vector<1x1x1x128xf32> to vector<1x16x16x128xf32>
    %69 = arith.addf %66, %68 : vector<1x16x16x128xf32>
    %c0_14 = arith.constant 0 : index
    %c0_15 = arith.constant 0 : index
    %c0_16 = arith.constant 0 : index
    %c0_17 = arith.constant 0 : index
    %70 = vector.load %arg6[%c0_14, %c0_15, %c0_16, %c0_17] : memref<1x16x16x128xf32, #tpu.memory_space<vmem>>, vector<1x16x16x128xf32>
    tpu.vector_store %arg6[%c0_14, %c0_15, %c0_16, %c0_17], %69 {strides = array<i32>} : memref<1x16x16x128xf32, #tpu.memory_space<vmem>>, vector<1x16x16x128xf32>,
    return
  }
  func.func @transform_0(%arg0: i32, %arg1: i32, %arg2: i32) -> (i32, i32, i32, i32) {
    %c0_i32 = arith.constant 0 : i32
    %c0_i32_0 = arith.constant 0 : i32
    %c0_i32_1 = arith.constant 0 : i32
    return %arg0, %c0_i32, %c0_i32_0, %arg1 : i32, i32, i32, i32
  }
  func.func @transform_1(%arg0: i32, %arg1: i32, %arg2: i32) -> (i32, i32, i32) {
    %c0_i32 = arith.constant 0 : i32
    %c0_i32_0 = arith.constant 0 : i32
    %c0_i32_1 = arith.constant 0 : i32
    return %c0_i32, %c0_i32_0, %arg1 : i32, i32, i32
  }
  func.func @transform_2(%arg0: i32, %arg1: i32, %arg2: i32) -> (i32, i32) {
    %c0_i32 = arith.constant 0 : i32
    %c0_i32_0 = arith.constant 0 : i32
    return %c0_i32, %arg1 : i32, i32
  }
  func.func @transform_3(%arg0: i32, %arg1: i32, %arg2: i32) -> (i32, i32, i32, i32) {
    %c0_i32 = arith.constant 0 : i32
    %c0_i32_0 = arith.constant 0 : i32
    return %arg0, %arg2, %c0_i32, %arg1 : i32, i32, i32, i32
  }
}

</mosaic_0001>

<bundles_post_ra>
// kernel: tpu_custom_call.1
= control target key start
LH: loop header
LB: loop body
LE: loop exit
PB: predicated region body
PF: predicated region fallthrough
CT: control target
= control target key end

     0   :  { %8 = vsyncpa [#allocation3], 0  ;;  %s4080_s0 = inlined_call_operand.hbm [shape: f32[2,18,24,128], index: 0, kind: input, shape index: {}]   ;;  %s4081_s1 = inlined_call_operand.hbm [shape: f32[3,3,128], index: 1, kind: input, shape index: {}]   ;;  %s4082_s2 = inlined_call_operand.vmem [shape: f32[1,128], index: 2, kind: input, shape index: {}]   ;;  %s4083_s3 = inlined_call_operand.hbm [shape: f32[2,16,16,128], index: 3, kind: output, shape index: {}]  }
   0x1   :  { %10 = vsyncpa [#allocation3 + $0x1], 0 }
   0x2   :  { %11 = vsyncpa [#allocation6], 0 }
   0x3   :  { %12 = vsyncpa [#allocation4], 0 }
   0x4   :  { %14 = vsyncpa [#allocation4 + $0x1], 0  ;;  %s2608_s12 = smov 0   ;;  %s2610_s13 = smov 0  }
   0x5   :  { %s2612_s14 = smov 0   ;;  %s2614_s15 = smov 0  }
   0x6   :  { %s2616_s16 = smov 0   ;;  %s2618_s17 = smov 0  }
   0x7 LB: > { %s2242_s18 = sadd.s32 4294967295, %s2577_s17   ;;  %s2243_s19 = sadd.s32 4294967294, %s2577_s17   ;;  %s2577_s17 = sphi %s2618_s17, %s20_s17   ;;  %s2573_s16 = sphi %s2616_s16, %s4099_s16   ;;  %s2569_s15 = sphi %s2614_s15, %s4098_s15   ;;  %s2565_s14 = sphi %s2612_s14, %s4097_s14   ;;  %s2561_s13 = sphi %s2610_s13, %s4096_s13   ;;  %s2557_s12 = sphi %s2608_s12, %s4095_s12  }
   0x8   : > { %p61_p0 = scmp.ne.s32.totalorder %s2561_s13, %s2557_s12  ;;  %p2642_p1 = scmp.eq.s32.totalorder %s2242_s18, 0 }
   0x9   : > { %p2646_p2 = scmp.eq.s32.totalorder %s2242_s18, 1  ;;  %p147_p3 = scmp.eq.s32.totalorder %s2243_s19, 1 }
   0xa   : > { %p2652_p4 = por %p2642_p1, %p61_p0  ;;  %p2244_p5 = scmp.ge.s32.totalorder %s2577_s17, 1 }
   0xb   : > { %p2657_p6 = por %p147_p3, %p61_p0  ;;  %p154_p7 = scmp.lt.s32.totalorder %s2577_s17, 3 }
   0xc   : > { %s4087_s22 = scalar_select %p2652_p4, 1, 0 }
   0xd   : > { %s4088_s23 = scalar_select %p2657_p6, 1, 0 }
   0xe   : > { %p2662_p8 = pnand %p2244_p5, %p154_p7  ;;  %s2579_s25 = smov [#allocation5]  }
   0xf   : > { %s168_s26 = sshll.u32 %s2579_s25, 4  ;;  %p2247_p10 = scmp.ge.s32.totalorder %s2577_s17, 2  ;;  %s169_s26 = int_to_ptr.vmem [resolvable:$true] %s168_s26 }
  0x10   : > { %p2366_p9 = pneg %p2662_p8  ;;  %s39_s28 = sadd.s32 1, %s2573_s16 }
  0x11   : > { %s2450_s29 = scalar_lea.vmem %s169_s26, 192  ;;  %p2458_p5 = scmp.lt.s32.totalorder %s169_s26, %s169_s26 }
  0x12   : > { %p2671_p11 = pnand %p2366_p9, %p2642_p1  ;;  %p2451_p13 = scmp.ne.s32.totalorder %s169_s26, %s2450_s29 }
  0x13   : > { %p2459_p7 = scmp.lt.s32.totalorder %s2450_s29, %s2450_s29 }
  0x14   : > { %p2441_p12 = pneg %p2671_p11 }
  0x15   : > { %p2460_p6 = por %p2459_p7, %p2458_p5 }
  0x16   : > { %p2453_p0 = pnand %p2451_p13, %p2441_p12 }
  0x18   : > { %p2454_p3 = pneg %p2453_p0 }
  0x1a   : > { %p2461_p4 = pnand %p2460_p6, %p2454_p3 }
  0x1c   : > { %2464 = shalt.err (!%p2461_p4)
}
  0x1d   : > { %s2580_s30 = smov 64   ;;  %s2581_s4 = smov 4  }
  0x1e   : > { %2369 = dma.hbm_to_vmem [thread:$0]  (!%p2671_p11), %s4081_s1, 192, %s169_s26, [#allocation6], %s2580_s30, %s2580_s30, %s2581_s4  }
  0x1f   : > { %p41_p6 = scmp.ge.s32.totalorder %s39_s28, 2  ;;  %s48_s7 = sadd.s32 1, %s2565_s14 }
  0x20   : > { %p55_p4 = scmp.ne.s32.totalorder %s2565_s14, %s2561_s13  ;;  %p56_p9 = scmp.eq.s32.totalorder %s2577_s17, 0 }
  0x21   : > { %s4101_s28 = smov (%p41_p6, %s39_s28), 0  ;;  %p2379_p0 = scmp.lt.s32.totalorder %s2577_s17, 2 }
  0x22   : > { %p57_p12 = por %p56_p9, %p55_p4  ;;  %p2691_p13 = por %p2646_p2, %p55_p4 }
  0x23   : > { %s43_s9 = ssub.s32 %s2573_s16, %s4101_s28  ;;  %s188_s10 = sand.u32 1, %s2565_s14  }
  0x24   : > { %p46_p3 = scmp.eq.s32.totalorder %s43_s9, 0  ;;  %s2355_s11 = smul.u32 432, %s188_s10 }
  0x25   : > { %s2356_s19 = smul.u32 6912, %s2573_s16  ;;  %p2703_p11 = pnand %p2379_p0, %p57_p12 }
  0x26   : > { %s2700_s18 = scalar_select %p46_p3, %s2565_s14, %s48_s7  }
  0x27   : > { %s192_s25 = scalar_lea.vmem [#allocation2], %s2355_s11  ;;  %s199_s30 = scalar_lea.hbm %s4080_s0, %s2356_s19 }
  0x28   : > { %s200_s26 = sshll.u32 %s192_s25, 4  ;;  %s189_s4 = scalar_lea.sflag [#allocation3], %s188_s10  ;;  %s201_s26 = int_to_ptr.vmem [resolvable:$true] %s200_s26 }
  0x29   : > { %p2467_p2 = pneg %p2703_p11  ;;  %s2478_s5 = scalar_lea.vmem %s201_s26, 6912 }
  0x2a   : > { %p2479_p5 = scmp.ne.s32.totalorder %s201_s26, %s2478_s5  ;;  %s2582_s6 = smov [#allocation2]  }
  0x2b   : > { %s2483_s7 = sshll.u32 %s2582_s6, 4  ;;  %s2484_s7 = int_to_ptr.vmem [resolvable:$false] %s2483_s7 }
  0x2c   : > { %p2481_p7 = pnand %p2479_p5, %p2467_p2  ;;  %s2485_s9 = scalar_lea.vmem %s2484_s7, 13824 }
  0x2d   : > { %p2486_p4 = scmp.lt.s32.totalorder %s201_s26, %s2484_s7  ;;  %p2487_p9 = scmp.lt.s32.totalorder %s2485_s9, %s2478_s5 }
  0x2e   : > { %p2482_p6 = pneg %p2481_p7 }
  0x2f   : > { %p2488_p12 = por %p2487_p9, %p2486_p4 }
  0x31   : > { %p2489_p0 = pnand %p2488_p12, %p2482_p6 }
  0x33   : > { %2492 = shalt.err (!%p2489_p0)
}
  0x34   : > { %s2583_s11 = smov 128   ;;  %s2584_s19 = smov 8  }
  0x35   : > { %2373 = dma.hbm_to_vmem [thread:$0]  (!%p2703_p11), %s199_s30, 6912, %s201_s26, %s189_s4, %s2583_s11, %s2583_s11, %s2584_s19  }
  0x36   : > { %212 = sbr.rel (%p2662_p8) target bundleno = 384 (0x180), region = 32  ;;  %s2717_s10 = sand.u32 (!%p2662_p8), 1, %s2561_s13  }
  0x37   : > { %s2357_s25 = smul.u32 (!%p2662_p8), 432, %s2717_s10  ;;  %s215_s29 = scalar_lea.sflag (!%p2662_p8), [#allocation3], %s2717_s10 }
  0x38   : > { %p4093_p3 = scmp.ne.s32.totalorder (!%p2662_p8), %s4087_s22, 0 }
  0x39   : > { %s2721_s21 = scalar_lea.vmem (!%p2662_p8), [#allocation2], %s2357_s25 }
  0x3b   : > { %2544 = dma.done.wait (%p4093_p3), %s215_s29, 6912  }
  0x3c   : > { %2546 = vsyncadd (%p4093_p3), %s215_s29, 4294960384 }
  0x3d   : > { %2548 = dma.done.wait (%p2642_p1), [#allocation6], 192  }
  0x3e   : > { %2550 = vsyncadd (%p2642_p1), [#allocation6], 4294967104  ;;  %v304_v0 = vlaneseq  ;;  %vm440_vm0 = vcmask 1046528   ;;  %v252_v5 = vld [vmem:[#allocation5] sm:$0x7]  ;;  %v257_v9 = vld [vmem:[%s2721_s21 + $0x8] sm:$0xff] }
  0x3f   : > { %v253_v6 = vld [vmem:[#allocation5 + $0x4] sm:$0x7]  ;;  %v254_v7 = vld [vmem:[#allocation5 + $0x8] sm:$0x7]  ;;  %vm685_vm1 = vcmask 1045504   ;;  %s2251_s20 = sshll.u32 %s2717_s10, 8 }
  0x40   : > { %v305_v1 = vshrl.u32 %v304_v0, 7  ;;  %v256_v8 = vld [vmem:[%s2721_s21] sm:$0xff]  ;;  %v2751_v20 = vld [vmem:[%s2721_s21 + $0x18] sm:$0xff]  ;;  %v2769_v35 = vld [vmem:[%s2721_s21 + $0x30] sm:$0xff]  ;;  %s2863_s26 = scalar_lea.vmem [#allocation7], %s2251_s20  ;;  %s2354_s6 = sshll.u32 %s2569_s15, 12 }
  0x41   : > { %v2754_v21 = vld [vmem:[%s2721_s21 + $0x20] sm:$0xff]  ;;  %v258_v40 = vld [vmem:[%s2721_s21 + $0x10] sm:$0xff]  ;;  %v2779_v44 = vld [vmem:[%s2721_s21 + $0x38] sm:$0xff]  ;;  %s2128_s7 = sshll.u32 %s2863_s26, 4  ;;  %s4028_s19 = scalar_lea.hbm %s4083_s3, %s2354_s6  ;;  %s4030_s7 = int_to_ptr.vmem [resolvable:$true] %s2128_s7 }
  0x42   : > { %v306_v2 = vsub.s32 0, %v305_v1  ;;  %v342_v3 = vsub.s32 1, %v305_v1  ;;  %v587_v4 = vsub.s32 2, %v305_v1  ;;  %v2797_v58 = vld [vmem:[%s2721_s21 + $0x28] sm:$0xff]  ;;  %s2111_s25 = scalar_lea.sflag [#allocation4], %s2717_s10  ;;  %s2493_s29 = scalar_lea.vmem %s4030_s7, 4096 }
  0x43   : > { %p2494_p1 = scmp.ne.s32.totalorder %s4030_s7, %s2493_s29  ;;  %s2585_s15 = smov [#allocation7]  }
  0x44   : > { %v2733_v10 = vrot.slane %v252_v5, %v306_v2  ;;  %v2735_v11 = vrot.slane %v252_v5, %v342_v3  ;;  %v2737_v12 = vrot.slane %v252_v5, %v587_v4  ;;  %v2739_v13 = vrot.slane %v253_v6, %v306_v2 }
  0x45   : > { %v2741_v14 = vrot.slane %v253_v6, %v342_v3  ;;  %v2743_v15 = vrot.slane %v253_v6, %v587_v4  ;;  %v2745_v16 = vrot.slane %v254_v7, %v306_v2  ;;  %v2756_v22 = vrot.slane %v254_v7, %v342_v3  ;;  %p2495_p8 = pnand %p2494_p1, %p2691_p13 }
  0x46   : > { %v344_v17 = vmul.f32 %v2735_v11, %v256_v8  ;;  %v345_v18 = vmul.f32 %v2735_v11, %v257_v9  ;;  %v589_v19 = vmul.f32 %v2737_v12, %v256_v8  ;;  %v308_v23 = vmul.f32 %v2733_v10, %v256_v8 }
  0x47   : > { %v590_v24 = vmul.f32 %v2737_v12, %v257_v9  ;;  %v951_v25 = vmul.f32 %v2751_v20, %v2741_v14  ;;  %v952_v26 = vmul.f32 %v2754_v21, %v2741_v14  ;;  %v1195_v30 = vmul.f32 %v2751_v20, %v2743_v15  ;;  %p2496_p11 = pneg %p2495_p8 }
  0x48   : > { %v441_v27 = vrot.slane %v344_v17, 1  ;;  %v442_v28 = vrot.slane %v345_v18, 1  ;;  %v686_v29 = vrot.slane %v589_v19, 2  ;;  %v1196_v34 = vmul.f32 %v2754_v21, %v2743_v15  ;;  %v2810_v18 = vld [vmem:[%s2721_s21 + $0x40] sm:$0xff] }
  0x49   : > { %v687_v31 = vrot.slane %v590_v24, 2  ;;  %v1047_v32 = vrot.slane %v951_v25, 1  ;;  %v1048_v33 = vrot.slane %v952_v26, 1  ;;  %v883_v37 = vmul.f32 %v2751_v20, %v2739_v13 }
  0x4a   : > { %v443_v36 = vsel %vm440_vm0, %v441_v27, %v442_v28  ;;  %v1291_v38 = vrot.slane %v1195_v30, 2  ;;  %v1556_v39 = vmul.f32 %v2769_v35, %v2756_v22  ;;  %v1292_v43 = vrot.slane %v1196_v34, 2 }
  0x4b   : > { %v553_v41 = vadd.f32 %v443_v36, %v308_v23  ;;  %v688_v42 = vsel %vm685_vm1, %v686_v29, %v687_v31  ;;  %v1488_v45 = vmul.f32 %v2769_v35, %v2745_v16  ;;  %v1049_v46 = vsel %vm440_vm0, %v1047_v32, %v1048_v33 }
  0x4c   : > { %v1557_v47 = vmul.f32 %v2779_v44, %v2756_v22  ;;  %v1652_v48 = vrot.slane %v1556_v39, 1  ;;  %v2786_v49 = vrot.slane %v254_v7, %v587_v4  ;;  %v309_v51 = vmul.f32 %v2733_v10, %v257_v9 }
  0x4d   : > { %v798_v50 = vadd.f32 %v688_v42, %v553_v41  ;;  %v346_v52 = vmul.f32 %v2735_v11, %v258_v40  ;;  %v591_v53 = vmul.f32 %v2737_v12, %v258_v40  ;;  %v1293_v54 = vsel %vm685_vm1, %v1291_v38, %v1292_v43 }
  0x4e   : > { %v1653_v55 = vrot.slane %v1557_v47, 1  ;;  %v1800_v56 = vmul.f32 %v2769_v35, %v2786_v49  ;;  %v1801_v57 = vmul.f32 %v2779_v44, %v2786_v49  ;;  %v953_v62 = vmul.f32 %v2797_v58, %v2741_v14 }
  0x4f   : > { %v915_v59 = vadd.f32 %v883_v37, %v798_v50  ;;  %v444_v60 = vrot.slane %v346_v52, 1  ;;  %v689_v61 = vrot.slane %v591_v53, 2  ;;  %v884_v1 = vmul.f32 %v2754_v21, %v2739_v13 }
  0x50   : > { %v1896_v63 = vrot.slane %v1800_v56, 2  ;;  %v1897_v0 = vrot.slane %v1801_v57, 2  ;;  %v1197_v2 = vmul.f32 %v2797_v58, %v2743_v15  ;;  %v1050_v6 = vrot.slane %v953_v62, 1 }
  0x51   : > { %v1159_v3 = vadd.f32 %v1049_v46, %v915_v59  ;;  %v445_v4 = vsel %vm440_vm0, %v442_v28, %v444_v60  ;;  %v690_v5 = vsel %vm685_vm1, %v687_v31, %v689_v61  ;;  %v1654_v7 = vsel %vm440_vm0, %v1652_v48, %v1653_v55 }
  0x52   : > { %v1898_v8 = vsel %vm685_vm1, %v1896_v63, %v1897_v0  ;;  %v554_v9 = vadd.f32 %v445_v4, %v309_v51  ;;  %v1294_v17 = vrot.slane %v1197_v2, 2  ;;  %v1489_v23 = vmul.f32 %v2779_v44, %v2745_v16  ;;  %v2861_v4 = vld [vmem:[%s2721_s21 + $0x50] sm:$0xff] }
  0x53   : > { %v1403_v19 = vadd.f32 %v1293_v54, %v1159_v3  ;;  %v1558_v24 = vmul.f32 %v2810_v18, %v2756_v22  ;;  %v1802_v25 = vmul.f32 %v2810_v18, %v2786_v49  ;;  %v1051_v27 = vsel %vm440_vm0, %v1048_v33, %v1050_v6  ;;  %v2858_v3 = vld [vmem:[%s2721_s21 + $0x48] sm:$0xff] }
  0x54   : > { %v799_v26 = vadd.f32 %v690_v5, %v554_v9  ;;  %v1295_v28 = vsel %vm685_vm1, %v1292_v43, %v1294_v17  ;;  %v347_v29 = vmul.f32 %v2751_v20, %v2735_v11  ;;  %v310_v32 = vmul.f32 %v2751_v20, %v2733_v10  ;;  %v2840_v43 = vld [vmem:[%s4082_s2] ss:$0 sm:$0xff] }
  0x55   : > { %v1520_v30 = vadd.f32 %v1488_v45, %v1403_v19  ;;  %v1655_v31 = vrot.slane %v1558_v24, 1  ;;  %v2826_v34 = vmul.f32 %v2754_v21, %v2735_v11  ;;  %v592_v38 = vmul.f32 %v2751_v20, %v2737_v12 }
  0x56   : > { %v916_v36 = vadd.f32 %v884_v1, %v799_v26  ;;  %v446_v37 = vrot.slane %v347_v29, 1  ;;  %v2832_v33 = vmul.f32 %v2754_v21, %v2737_v12  ;;  %v1899_v41 = vrot.slane %v1802_v25, 2 }
  0x57   : > { %v1764_v39 = vadd.f32 %v1654_v7, %v1520_v30  ;;  %v1656_v40 = vsel %vm440_vm0, %v1653_v55, %v1655_v31  ;;  %v447_v42 = vrot.slane %v2826_v34, 1  ;;  %v691_v46 = vrot.slane %v592_v38, 2 }
  0x58   : > { %v1160_v45 = vadd.f32 %v1051_v27, %v916_v36  ;;  %v692_v20 = vrot.slane %v2832_v33, 2  ;;  %v885_v47 = vmul.f32 %v2769_v35, %v2739_v13  ;;  %v954_v51 = vmul.f32 %v2769_v35, %v2741_v14 }
  0x59   : > { %v2008_v48 = vadd.f32 %v1898_v8, %v1764_v39  ;;  %v448_v50 = vsel %vm440_vm0, %v446_v37, %v447_v42  ;;  %v955_v52 = vmul.f32 %v2779_v44, %v2741_v14  ;;  %v1198_v56 = vmul.f32 %v2769_v35, %v2743_v15 }
  0x5a   : > { %v1404_v53 = vadd.f32 %v1295_v28, %v1160_v45  ;;  %v555_v54 = vadd.f32 %v448_v50, %v310_v32  ;;  %v693_v55 = vsel %vm685_vm1, %v691_v46, %v692_v20  ;;  %v1052_v59 = vrot.slane %v954_v51, 1  ;;  %v2894_v46 = vld [vmem:[%s2721_s21 + $0x58] sm:$0xff] }
  0x5b   : > { %v2046_v57 = vadd.f32 %v2840_v43, %v2008_v48  ;;  %v1053_v60 = vrot.slane %v955_v52, 1  ;;  %v1199_v61 = vmul.f32 %v2779_v44, %v2743_v15  ;;  %v1900_v63 = vsel %vm685_vm1, %v1897_v0, %v1899_v41 }
  0x5c   : > { %v1521_v62 = vadd.f32 %v1489_v23, %v1404_v53  ;;  %v800_v1 = vadd.f32 %v693_v55, %v555_v54  ;;  %v1296_v2 = vrot.slane %v1198_v56, 2  ;;  %v1559_v7 = vmul.f32 %v2858_v3, %v2756_v22 }
  0x5d   : > { %2078 = vst [vmem:[%s2863_s26] sm:$0xff] %v2046_v57  ;;  %v1054_v5 = vsel %vm440_vm0, %v1052_v59, %v1053_v60  ;;  %v1297_v6 = vrot.slane %v1199_v61, 2  ;;  %v1560_v8 = vmul.f32 %v2861_v4, %v2756_v22  ;;  %v1803_v17 = vmul.f32 %v2858_v3, %v2786_v49 }
  0x5e   : > { %v1765_v0 = vadd.f32 %v1656_v40, %v1521_v62  ;;  %v917_v9 = vadd.f32 %v885_v47, %v800_v1  ;;  %v1804_v19 = vmul.f32 %v2861_v4, %v2786_v49  ;;  %v1490_v24 = vmul.f32 %v2858_v3, %v2745_v16 }
  0x5f   : > { %v1298_v23 = vsel %vm685_vm1, %v1296_v2, %v1297_v6  ;;  %v1657_v25 = vrot.slane %v1559_v7, 1  ;;  %v1658_v26 = vrot.slane %v1560_v8, 1  ;;  %v1901_v29 = vrot.slane %v1803_v17, 2 }
  0x60   : > { %v2009_v27 = vadd.f32 %v1900_v63, %v1765_v0  ;;  %v1161_v28 = vadd.f32 %v1054_v5, %v917_v9  ;;  %v1902_v30 = vrot.slane %v1804_v19, 2  ;;  %v311_v32 = vmul.f32 %v2754_v21, %v2733_v10 }
  0x61   : > { %v1659_v31 = vsel %vm440_vm0, %v1657_v25, %v1658_v26  ;;  %v349_v34 = vmul.f32 %v2797_v58, %v2735_v11  ;;  %v594_v36 = vmul.f32 %v2797_v58, %v2737_v12  ;;  %v886_v33 = vmul.f32 %v2779_v44, %v2739_v13 }
  0x62   : > { %v2047_v37 = vadd.f32 %v2840_v43, %v2009_v27  ;;  %v1405_v38 = vadd.f32 %v1298_v23, %v1161_v28  ;;  %v956_v39 = vmul.f32 %v2810_v18, %v2741_v14  ;;  %v1903_v40 = vsel %vm685_vm1, %v1901_v29, %v1902_v30 }
  0x63   : > { %v449_v41 = vrot.slane %v349_v34, 1  ;;  %v694_v45 = vrot.slane %v594_v36, 2  ;;  %v1200_v21 = vmul.f32 %v2810_v18, %v2743_v15  ;;  %v1561_v48 = vmul.f32 %v2894_v46, %v2756_v22 }
  0x64   : > { %2079 = vst [vmem:[%s2863_s26 + $0x8] sm:$0xff] %v2047_v37  ;;  %v1522_v58 = vadd.f32 %v1490_v24, %v1405_v38  ;;  %v1055_v47 = vrot.slane %v956_v39, 1  ;;  %v1805_v50 = vmul.f32 %v2894_v46, %v2786_v49  ;;  %v1491_v54 = vmul.f32 %v2861_v4, %v2745_v16 }
  0x65   : > { %v450_v51 = vsel %vm440_vm0, %v447_v42, %v449_v41  ;;  %v695_v52 = vsel %vm685_vm1, %v692_v20, %v694_v45  ;;  %v1299_v53 = vrot.slane %v1200_v21, 2  ;;  %v1660_v57 = vrot.slane %v1561_v48, 1  ;;  %v2940_v41 = vld [vmem:[%s2721_s21 + $0x68] sm:$0xff] }
  0x66   : > { %v1766_v55 = vadd.f32 %v1659_v31, %v1522_v58  ;;  %v556_v56 = vadd.f32 %v450_v51, %v311_v32  ;;  %v312_v59 = vmul.f32 %v2769_v35, %v2733_v10  ;;  %v1056_v61 = vsel %vm440_vm0, %v1053_v60, %v1055_v47 }
  0x67   : > { %v1300_v62 = vsel %vm685_vm1, %v1297_v6, %v1299_v53  ;;  %v350_v63 = vmul.f32 %v2769_v35, %v2735_v11  ;;  %v2913_v42 = vmul.f32 %v2779_v44, %v2735_v11  ;;  %v1904_v2 = vrot.slane %v1805_v50, 2 }
  0x68   : > { %v2010_v20 = vadd.f32 %v1903_v40, %v1766_v55  ;;  %v801_v1 = vadd.f32 %v695_v52, %v556_v56  ;;  %v595_v5 = vmul.f32 %v2769_v35, %v2737_v12  ;;  %v1661_v7 = vsel %vm440_vm0, %v1658_v26, %v1660_v57  ;;  %v2937_v40 = vld [vmem:[%s2721_s21 + $0x60] sm:$0xff] }
  0x69   : > { %v451_v8 = vrot.slane %v350_v63, 1  ;;  %v452_v60 = vrot.slane %v2913_v42, 1  ;;  %v596_v6 = vmul.f32 %v2779_v44, %v2737_v12  ;;  %v887_v19 = vmul.f32 %v2858_v3, %v2739_v13 }
  0x6a   : > { %v2048_v0 = vadd.f32 %v2840_v43, %v2010_v20  ;;  %v918_v9 = vadd.f32 %v886_v33, %v801_v1  ;;  %v696_v17 = vrot.slane %v595_v5, 2  ;;  %v957_v35 = vmul.f32 %v2858_v3, %v2741_v14 }
  0x6b   : > { %v453_v23 = vsel %vm440_vm0, %v451_v8, %v452_v60  ;;  %v697_v24 = vrot.slane %v596_v6, 2  ;;  %v958_v25 = vmul.f32 %v2861_v4, %v2741_v14  ;;  %v1201_v28 = vmul.f32 %v2858_v3, %v2743_v15 }
  0x6c   : > { %2080 = vst [vmem:[%s2863_s26 + $0x10] sm:$0xff] %v2048_v0  ;;  %v1162_v26 = vadd.f32 %v1056_v61, %v918_v9  ;;  %v557_v27 = vadd.f32 %v453_v23, %v312_v59  ;;  %v1202_v29 = vmul.f32 %v2861_v4, %v2743_v15  ;;  %v1905_v31 = vsel %vm685_vm1, %v1902_v30, %v1904_v2  ;;  %v2972_v9 = vld [vmem:[%s2721_s21 + $0x70] sm:$0xff] }
  0x6d   : > { %v698_v32 = vsel %vm685_vm1, %v696_v17, %v697_v24  ;;  %v1057_v34 = vrot.slane %v957_v35, 1  ;;  %v1058_v36 = vrot.slane %v958_v25, 1  ;;  %v1301_v33 = vrot.slane %v1201_v28, 2 }
  0x6e   : > { %v1406_v37 = vadd.f32 %v1300_v62, %v1162_v26  ;;  %v802_v38 = vadd.f32 %v698_v32, %v557_v27  ;;  %v1302_v39 = vrot.slane %v1202_v29, 2  ;;  %v1562_v21 = vmul.f32 %v2937_v40, %v2756_v22 }
  0x6f   : > { %v1059_v45 = vsel %vm440_vm0, %v1057_v34, %v1058_v36  ;;  %v1563_v30 = vmul.f32 %v2940_v41, %v2756_v22  ;;  %v1806_v58 = vmul.f32 %v2937_v40, %v2786_v49  ;;  %v1492_v50 = vmul.f32 %v2937_v40, %v2745_v16 }
  0x70   : > { %v1523_v47 = vadd.f32 %v1491_v54, %v1406_v37  ;;  %v919_v48 = vadd.f32 %v887_v19, %v802_v38  ;;  %v2953_v51 = vmul.f32 %v2940_v41, %v2786_v49  ;;  %v1303_v52 = vsel %vm685_vm1, %v1301_v33, %v1302_v39 }
  0x71   : > { %v1662_v53 = vrot.slane %v1562_v21, 1  ;;  %v1663_v55 = vrot.slane %v1563_v30, 1  ;;  %v1906_v56 = vrot.slane %v1806_v58, 2  ;;  %v352_v54 = vmul.f32 %v2810_v18, %v2735_v11 }
  0x72   : > { %v1767_v57 = vadd.f32 %v1661_v7, %v1523_v47  ;;  %v1163_v59 = vadd.f32 %v1059_v45, %v919_v48  ;;  %v1907_v61 = vrot.slane %v2953_v51, 2  ;;  %v313_v63 = vmul.f32 %v2779_v44, %v2733_v10 }
  0x73   : > { %v1664_v62 = vsel %vm440_vm0, %v1662_v53, %v1663_v55  ;;  %v597_v42 = vmul.f32 %v2810_v18, %v2737_v12  ;;  %v959_v20 = vmul.f32 %v2894_v46, %v2741_v14  ;;  %v454_v5 = vrot.slane %v352_v54, 1 }
  0x74   : > { %v2011_v1 = vadd.f32 %v1905_v31, %v1767_v57  ;;  %v1407_v2 = vadd.f32 %v1303_v52, %v1163_v59  ;;  %v888_v7 = vmul.f32 %v2861_v4, %v2739_v13  ;;  %v1908_v8 = vsel %vm685_vm1, %v1906_v56, %v1907_v61 }
  0x75   : > { %v699_v6 = vrot.slane %v597_v42, 2  ;;  %v1060_v0 = vrot.slane %v959_v20, 1  ;;  %v1203_v44 = vmul.f32 %v2894_v46, %v2743_v15  ;;  %v455_v19 = vsel %vm440_vm0, %v452_v60, %v454_v5 }
  0x76   : > { %v2049_v18 = vadd.f32 %v2840_v43, %v2011_v1  ;;  %v1524_v17 = vadd.f32 %v1492_v50, %v1407_v2  ;;  %v1564_v23 = vmul.f32 %v2972_v9, %v2756_v22  ;;  %v558_v35 = vadd.f32 %v455_v19, %v313_v63 }
  0x77   : > { %v700_v25 = vsel %vm685_vm1, %v697_v24, %v699_v6  ;;  %v1304_v26 = vrot.slane %v1203_v44, 2  ;;  %v1493_v27 = vmul.f32 %v2940_v41, %v2745_v16  ;;  %v1061_v29 = vsel %vm440_vm0, %v1058_v36, %v1060_v0  ;;  %v3019_v6 = vld [vmem:[%s2721_s21 + $0x80] sm:$0xff] }
  0x78   : > { %2081 = vst [vmem:[%s2863_s26 + $0x18] sm:$0xff] %v2049_v18  ;;  %v1768_v28 = vadd.f32 %v1664_v62, %v1524_v17  ;;  %v1665_v31 = vrot.slane %v1564_v23, 1  ;;  %v1808_v32 = vmul.f32 %v2972_v9, %v2786_v49  ;;  %v803_v34 = vadd.f32 %v700_v25, %v558_v35 }
  0x79   : > { %v314_v60 = vmul.f32 %v2858_v3, %v2733_v10  ;;  %v353_v37 = vmul.f32 %v2858_v3, %v2735_v11  ;;  %v2991_v24 = vmul.f32 %v2861_v4, %v2735_v11  ;;  %v1305_v33 = vsel %vm685_vm1, %v1302_v39, %v1304_v26 }
  0x7a   : > { %v2012_v38 = vadd.f32 %v1908_v8, %v1768_v28  ;;  %v1909_v36 = vrot.slane %v1808_v32, 2  ;;  %v598_v45 = vmul.f32 %v2858_v3, %v2737_v12  ;;  %v920_v21 = vadd.f32 %v888_v7, %v803_v34  ;;  %v3016_v8 = vld [vmem:[%s2721_s21 + $0x78] sm:$0xff] }
  0x7b   : > { %v456_v30 = vrot.slane %v353_v37, 1  ;;  %v457_v58 = vrot.slane %v2991_v24, 1  ;;  %v599_v47 = vmul.f32 %v2861_v4, %v2737_v12  ;;  %v1666_v50 = vsel %vm440_vm0, %v1663_v55, %v1665_v31 }
  0x7c   : > { %v2050_v48 = vadd.f32 %v2840_v43, %v2012_v38  ;;  %v701_v51 = vrot.slane %v598_v45, 2  ;;  %v889_v52 = vmul.f32 %v2937_v40, %v2739_v13  ;;  %v1164_v39 = vadd.f32 %v1061_v29, %v920_v21 }
  0x7d   : > { %v458_v53 = vsel %vm440_vm0, %v456_v30, %v457_v58  ;;  %v702_v3 = vrot.slane %v599_v47, 2  ;;  %v960_v56 = vmul.f32 %v2937_v40, %v2741_v14  ;;  %v961_v59 = vmul.f32 %v2940_v41, %v2741_v14 }
  0x7e   : > { %2082 = vst [vmem:[%s2863_s26 + $0x20] sm:$0xff] %v2050_v48  ;;  %v559_v57 = vadd.f32 %v458_v53, %v314_v60  ;;  %v1204_v55 = vmul.f32 %v2937_v40, %v2743_v15  ;;  %v1205_v54 = vmul.f32 %v2940_v41, %v2743_v15  ;;  %v1408_v62 = vadd.f32 %v1305_v33, %v1164_v39 }
  0x7f   : > { %v1910_v63 = vsel %vm685_vm1, %v1907_v61, %v1909_v36  ;;  %v703_v42 = vsel %vm685_vm1, %v701_v51, %v702_v3  ;;  %v1062_v20 = vrot.slane %v960_v56, 1  ;;  %v1063_v2 = vrot.slane %v961_v59, 1 }
  0x80   : > { %v804_v1 = vadd.f32 %v703_v42, %v559_v57  ;;  %v1306_v5 = vrot.slane %v1204_v55, 2  ;;  %v1307_v7 = vrot.slane %v1205_v54, 2  ;;  %v1525_v0 = vadd.f32 %v1493_v27, %v1408_v62 }
  0x81   : > { %v1565_v44 = vmul.f32 %v3016_v8, %v2756_v22  ;;  %v1566_v18 = vmul.f32 %v3019_v6, %v2756_v22  ;;  %v1809_v61 = vmul.f32 %v3016_v8, %v2786_v49  ;;  %v1064_v19 = vsel %vm440_vm0, %v1062_v20, %v1063_v2 }
  0x82   : > { %v921_v17 = vadd.f32 %v889_v52, %v804_v1  ;;  %v1308_v23 = vsel %vm685_vm1, %v1306_v5, %v1307_v7  ;;  %v3031_v35 = vmul.f32 %v3019_v6, %v2786_v49  ;;  %v1769_v25 = vadd.f32 %v1666_v50, %v1525_v0  ;;  %v3054_v50 = vld [vmem:[%s2721_s21 + $0x88] sm:$0xff] }
  0x83   : > { %v1667_v26 = vrot.slane %v1565_v44, 1  ;;  %v1668_v27 = vrot.slane %v1566_v18, 1  ;;  %v1911_v28 = vrot.slane %v1809_v61, 2  ;;  %v1494_v31 = vmul.f32 %v3016_v8, %v2745_v16 }
  0x84   : > { %v1165_v29 = vadd.f32 %v1064_v19, %v921_v17  ;;  %v1912_v32 = vrot.slane %v3031_v35, 2  ;;  %v355_v34 = vmul.f32 %v2894_v46, %v2735_v11  ;;  %v2013_v60 = vadd.f32 %v1910_v63, %v1769_v25 }
  0x85   : > { %v1669_v37 = vsel %vm440_vm0, %v1667_v26, %v1668_v27  ;;  %v315_v24 = vmul.f32 %v2861_v4, %v2733_v10  ;;  %v600_v38 = vmul.f32 %v2894_v46, %v2737_v12  ;;  %v890_v45 = vmul.f32 %v2940_v41, %v2739_v13 }
  0x86   : > { %v1409_v33 = vadd.f32 %v1308_v23, %v1165_v29  ;;  %v459_v36 = vrot.slane %v355_v34, 1  ;;  %v962_v21 = vmul.f32 %v2972_v9, %v2741_v14  ;;  %v2051_v30 = vadd.f32 %v2840_v43, %v2013_v60 }
  0x87   : > { %v1913_v47 = vsel %vm685_vm1, %v1911_v28, %v1912_v32  ;;  %v704_v48 = vrot.slane %v600_v38, 2  ;;  %v1206_v4 = vmul.f32 %v2972_v9, %v2743_v15  ;;  %v1567_v39 = vmul.f32 %v3054_v50, %v2756_v22 }
  0x88   : > { %v1526_v46 = vadd.f32 %v1494_v31, %v1409_v33  ;;  %v460_v51 = vsel %vm440_vm0, %v457_v58, %v459_v36  ;;  %v1065_v52 = vrot.slane %v962_v21, 1  ;;  %2083 = vst [vmem:[%s2863_s26 + $0x28] sm:$0xff] %v2051_v30  ;;  %v1811_v59 = vmul.f32 %v3054_v50, %v2786_v49  ;;  %v3093_v33 = vld [vmem:[%s2721_s21 + $0x90] sm:$0xff]  ;;  %v3096_v30 = vld [vmem:[%s2721_s21 + $0x98] sm:$0xff] }
  0x89   : > { %v560_v53 = vadd.f32 %v460_v51, %v315_v24  ;;  %v705_v56 = vsel %vm685_vm1, %v702_v3, %v704_v48  ;;  %v1309_v57 = vrot.slane %v1206_v4, 2  ;;  %v1495_v54 = vmul.f32 %v3019_v6, %v2745_v16 }
  0x8a   : > { %v1770_v55 = vadd.f32 %v1669_v37, %v1526_v46  ;;  %v1670_v62 = vrot.slane %v1567_v39, 1  ;;  %v1066_v58 = vsel %vm440_vm0, %v1063_v2, %v1065_v52  ;;  %v316_v42 = vmul.f32 %v2937_v40, %v2733_v10 }
  0x8b   : > { %v805_v63 = vadd.f32 %v705_v56, %v560_v53  ;;  %v356_v20 = vmul.f32 %v2937_v40, %v2735_v11  ;;  %v1310_v3 = vsel %vm685_vm1, %v1307_v7, %v1309_v57  ;;  %v357_v5 = vmul.f32 %v2940_v41, %v2735_v11 }
  0x8c   : > { %v2014_v1 = vadd.f32 %v1913_v47, %v1770_v55  ;;  %v601_v0 = vmul.f32 %v2937_v40, %v2737_v12  ;;  %v1914_v18 = vrot.slane %v1811_v59, 2  ;;  %v602_v2 = vmul.f32 %v2940_v41, %v2737_v12 }
  0x8d   : > { %v922_v44 = vadd.f32 %v890_v45, %v805_v63  ;;  %v461_v61 = vrot.slane %v356_v20, 1  ;;  %v1671_v19 = vsel %vm440_vm0, %v1668_v27, %v1670_v62  ;;  %v462_v23 = vrot.slane %v357_v5, 1 }
  0x8e   : > { %v2052_v17 = vadd.f32 %v2840_v43, %v2014_v1  ;;  %v706_v25 = vrot.slane %v601_v0, 2  ;;  %v707_v26 = vrot.slane %v602_v2, 2  ;;  %v963_v28 = vmul.f32 %v3016_v8, %v2741_v14 }
  0x8f   : > { %v1166_v7 = vadd.f32 %v1066_v58, %v922_v44  ;;  %v964_v40 = vmul.f32 %v3019_v6, %v2741_v14  ;;  %v463_v29 = vsel %vm440_vm0, %v461_v61, %v462_v23  ;;  %v891_v31 = vmul.f32 %v3016_v8, %v2739_v13 }
  0x90   : > { %2084 = vst [vmem:[%s2863_s26 + $0x30] sm:$0xff] %v2052_v17  ;;  %v1207_v27 = vmul.f32 %v3016_v8, %v2743_v15  ;;  %v1208_v34 = vmul.f32 %v3019_v6, %v2743_v15  ;;  %v561_v37 = vadd.f32 %v463_v29, %v316_v42  ;;  %v708_v24 = vsel %vm685_vm1, %v706_v25, %v707_v26  ;;  %v3134_v17 = vld [vmem:[%s2721_s21 + $0xa0] sm:$0xff] }
  0x91   : > { %v1410_v60 = vadd.f32 %v1310_v3, %v1166_v7  ;;  %v1067_v38 = vrot.slane %v963_v28, 1  ;;  %v1068_v36 = vrot.slane %v964_v40, 1  ;;  %v1568_v47 = vmul.f32 %v3093_v33, %v2756_v22 }
  0x92   : > { %v1311_v45 = vrot.slane %v1207_v27, 2  ;;  %v1312_v21 = vrot.slane %v1208_v34, 2  ;;  %v806_v4 = vadd.f32 %v708_v24, %v561_v37  ;;  %v3102_v46 = vmul.f32 %v3096_v30, %v2756_v22 }
  0x93   : > { %v1527_v48 = vadd.f32 %v1495_v54, %v1410_v60  ;;  %v1812_v51 = vmul.f32 %v3093_v33, %v2786_v49  ;;  %v1915_v52 = vsel %vm685_vm1, %v1912_v32, %v1914_v18  ;;  %v1069_v39 = vsel %vm440_vm0, %v1067_v38, %v1068_v36 }
  0x94   : > { %v1672_v53 = vrot.slane %v1568_v47, 1  ;;  %v3112_v56 = vmul.f32 %v3096_v30, %v2786_v49  ;;  %v923_v59 = vadd.f32 %v891_v31, %v806_v4  ;;  %v1496_v55 = vmul.f32 %v3093_v33, %v2745_v16 }
  0x95   : > { %v1771_v57 = vadd.f32 %v1671_v19, %v1527_v48  ;;  %v1673_v54 = vrot.slane %v3102_v46, 1  ;;  %v1313_v62 = vsel %vm685_vm1, %v1311_v45, %v1312_v21  ;;  %v1916_v35 = vrot.slane %v1812_v51, 2 }
  0x96   : > { %v358_v32 = vmul.f32 %v2972_v9, %v2735_v11  ;;  %v603_v63 = vmul.f32 %v2972_v9, %v2737_v12  ;;  %v1167_v42 = vadd.f32 %v1069_v39, %v923_v59  ;;  %v1917_v20 = vrot.slane %v3112_v56, 2 }
  0x97   : > { %v2015_v58 = vadd.f32 %v1915_v52, %v1771_v57  ;;  %v317_v1 = vmul.f32 %v2940_v41, %v2733_v10  ;;  %v1674_v3 = vsel %vm440_vm0, %v1672_v53, %v1673_v54  ;;  %v965_v44 = vmul.f32 %v3054_v50, %v2741_v14 }
  0x98   : > { %v464_v5 = vrot.slane %v358_v32, 1  ;;  %v709_v0 = vrot.slane %v603_v63, 2  ;;  %v1411_v61 = vadd.f32 %v1313_v62, %v1167_v42  ;;  %v892_v9 = vmul.f32 %v3019_v6, %v2739_v13 }
  0x99   : > { %v2053_v18 = vadd.f32 %v2840_v43, %v2015_v58  ;;  %v1209_v2 = vmul.f32 %v3054_v50, %v2743_v15  ;;  %v1070_v25 = vrot.slane %v965_v44, 1  ;;  %v1570_v7 = vmul.f32 %v3134_v17, %v2756_v22 }
  0x9a   : > { %v465_v41 = vsel %vm440_vm0, %v462_v23, %v464_v5  ;;  %v710_v19 = vsel %vm685_vm1, %v707_v26, %v709_v0  ;;  %v1528_v28 = vadd.f32 %v1496_v55, %v1411_v61  ;;  %v1814_v31 = vmul.f32 %v3134_v17, %v2786_v49  ;;  %v3173_v5 = vld [vmem:[%s2721_s21 + $0xa8] sm:$0xff]  ;;  %v3177_v61 = vld [vmem:[%s2721_s21 + $0xb0] sm:$0xff] }
  0x9b   : > { %2085 = vst [vmem:[%s2863_s26 + $0x38] sm:$0xff] %v2053_v18  ;;  %v562_v40 = vadd.f32 %v465_v41, %v317_v1  ;;  %v1314_v29 = vrot.slane %v1209_v2, 2  ;;  %v1918_v27 = vsel %vm685_vm1, %v1916_v35, %v1917_v20  ;;  %v1071_v34 = vsel %vm440_vm0, %v1068_v36, %v1070_v25 }
  0x9c   : > { %v1497_v23 = vmul.f32 %v3096_v30, %v2745_v16  ;;  %v359_v26 = vmul.f32 %v3016_v8, %v2735_v11  ;;  %v1772_v60 = vadd.f32 %v1674_v3, %v1528_v28  ;;  %v1675_v24 = vrot.slane %v1570_v7, 1 }
  0x9d   : > { %v807_v37 = vadd.f32 %v710_v19, %v562_v40  ;;  %v318_v38 = vmul.f32 %v3016_v8, %v2733_v10  ;;  %v1315_v45 = vsel %vm685_vm1, %v1312_v21, %v1314_v29  ;;  %v360_v47 = vmul.f32 %v3019_v6, %v2735_v11 }
  0x9e   : > { %v466_v48 = vrot.slane %v359_v26, 1  ;;  %v604_v36 = vmul.f32 %v3016_v8, %v2737_v12  ;;  %v2016_v4 = vadd.f32 %v1918_v27, %v1772_v60  ;;  %v1919_v51 = vrot.slane %v1814_v31, 2 }
  0x9f   : > { %v924_v46 = vadd.f32 %v892_v9, %v807_v37  ;;  %v605_v52 = vmul.f32 %v3019_v6, %v2737_v12  ;;  %v467_v39 = vrot.slane %v360_v47, 1  ;;  %v893_v21 = vmul.f32 %v3093_v33, %v2739_v13 }
  0xa0   : > { %v711_v53 = vrot.slane %v604_v36, 2  ;;  %v966_v56 = vmul.f32 %v3093_v33, %v2741_v14  ;;  %v2054_v57 = vadd.f32 %v2840_v43, %v2016_v4  ;;  %v967_v55 = vmul.f32 %v3096_v30, %v2741_v14 }
  0xa1   : > { %v1168_v59 = vadd.f32 %v1071_v34, %v924_v46  ;;  %v712_v8 = vrot.slane %v605_v52, 2  ;;  %v468_v62 = vsel %vm440_vm0, %v466_v48, %v467_v39  ;;  %v1210_v32 = vmul.f32 %v3093_v33, %v2743_v15  ;;  %v3213_v52 = vld [vmem:[%s2721_s21 + $0xb8] sm:$0xff] }
  0xa2   : > { %v1072_v35 = vrot.slane %v966_v56, 1  ;;  %v1211_v63 = vmul.f32 %v3096_v30, %v2743_v15  ;;  %2086 = vst [vmem:[%s2863_s26 + $0x40] sm:$0xff] %v2054_v57  ;;  %v563_v42 = vadd.f32 %v468_v62, %v318_v38  ;;  %v1073_v3 = vrot.slane %v967_v55, 1 }
  0xa3   : > { %v1412_v58 = vadd.f32 %v1315_v45, %v1168_v59  ;;  %v713_v1 = vsel %vm685_vm1, %v711_v53, %v712_v8  ;;  %v1676_v0 = vsel %vm440_vm0, %v1673_v54, %v1675_v24  ;;  %v1316_v44 = vrot.slane %v1210_v32, 2 }
  0xa4   : > { %v1317_v18 = vrot.slane %v1211_v63, 2  ;;  %v1571_v9 = vmul.f32 %v3173_v5, %v2756_v22  ;;  %v1920_v41 = vsel %vm685_vm1, %v1917_v20, %v1919_v51  ;;  %v808_v19 = vadd.f32 %v713_v1, %v563_v42 }
  0xa5   : > { %v1529_v2 = vadd.f32 %v1497_v23, %v1412_v58  ;;  %v3184_v25 = vmul.f32 %v3177_v61, %v2756_v22  ;;  %v1074_v7 = vsel %vm440_vm0, %v1072_v35, %v1073_v3  ;;  %v1815_v54 = vmul.f32 %v3173_v5, %v2786_v49 }
  0xa6   : > { %v1677_v28 = vrot.slane %v1571_v9, 1  ;;  %v3191_v40 = vmul.f32 %v3177_v61, %v2786_v49  ;;  %v925_v31 = vadd.f32 %v893_v21, %v808_v19  ;;  %v1498_v20 = vmul.f32 %v3173_v5, %v2745_v16 }
  0xa7   : > { %v1773_v29 = vadd.f32 %v1676_v0, %v1529_v2  ;;  %v1678_v27 = vrot.slane %v3184_v25, 1  ;;  %v1318_v34 = vsel %vm685_vm1, %v1316_v44, %v1317_v18  ;;  %v319_v23 = vmul.f32 %v3019_v6, %v2733_v10 }
  0xa8   : > { %v361_v26 = vmul.f32 %v3054_v50, %v2735_v11  ;;  %v606_v60 = vmul.f32 %v3054_v50, %v2737_v12  ;;  %v1169_v24 = vadd.f32 %v1074_v7, %v925_v31  ;;  %v1921_v38 = vrot.slane %v1815_v54, 2 }
  0xa9   : > { %v2017_v37 = vadd.f32 %v1920_v41, %v1773_v29  ;;  %v1922_v45 = vrot.slane %v3191_v40, 2  ;;  %v1679_v47 = vsel %vm440_vm0, %v1677_v28, %v1678_v27  ;;  %v968_v4 = vmul.f32 %v3134_v17, %v2741_v14 }
  0xaa   : > { %v469_v48 = vrot.slane %v361_v26, 1  ;;  %v714_v36 = vrot.slane %v606_v60, 2  ;;  %v1413_v46 = vadd.f32 %v1318_v34, %v1169_v24  ;;  %v894_v51 = vmul.f32 %v3096_v30, %v2739_v13 }
  0xab   : > { %v2055_v6 = vadd.f32 %v2840_v43, %v2017_v37  ;;  %v1212_v50 = vmul.f32 %v3134_v17, %v2743_v15  ;;  %v1075_v56 = vrot.slane %v968_v4, 1  ;;  %v1573_v57 = vmul.f32 %v3213_v52, %v2756_v22 }
  0xac   : > { %v470_v53 = vsel %vm440_vm0, %v467_v39, %v469_v48  ;;  %v715_v21 = vsel %vm685_vm1, %v712_v8, %v714_v36  ;;  %v1530_v59 = vadd.f32 %v1498_v20, %v1413_v46  ;;  %v1817_v35 = vmul.f32 %v3213_v52, %v2786_v49  ;;  %v3252_v48 = vld [vmem:[%s2721_s21 + $0xc0] sm:$0xff]  ;;  %v3256_v46 = vld [vmem:[%s2721_s21 + $0xc8] sm:$0xff] }
  0xad   : > { %2087 = vst [vmem:[%s2863_s26 + $0x48] sm:$0xff] %v2055_v6  ;;  %v564_v55 = vadd.f32 %v470_v53, %v319_v23  ;;  %v1319_v62 = vrot.slane %v1212_v50, 2  ;;  %v1923_v32 = vsel %vm685_vm1, %v1921_v38, %v1922_v45  ;;  %v1076_v63 = vsel %vm440_vm0, %v1073_v3, %v1075_v56 }
  0xae   : > { %v1499_v39 = vmul.f32 %v3177_v61, %v2745_v16  ;;  %v362_v8 = vmul.f32 %v3093_v33, %v2735_v11  ;;  %v1774_v58 = vadd.f32 %v1679_v47, %v1530_v59  ;;  %v1680_v1 = vrot.slane %v1573_v57, 1 }
  0xaf   : > { %v809_v42 = vadd.f32 %v715_v21, %v564_v55  ;;  %v320_v0 = vmul.f32 %v3093_v33, %v2733_v10  ;;  %v1320_v44 = vsel %vm685_vm1, %v1317_v18, %v1319_v62  ;;  %v363_v9 = vmul.f32 %v3096_v30, %v2735_v11 }
  0xb0   : > { %v471_v2 = vrot.slane %v362_v8, 1  ;;  %v607_v3 = vmul.f32 %v3093_v33, %v2737_v12  ;;  %v2018_v41 = vadd.f32 %v1923_v32, %v1774_v58  ;;  %v1924_v25 = vrot.slane %v1817_v35, 2 }
  0xb1   : > { %v926_v19 = vadd.f32 %v894_v51, %v809_v42  ;;  %v608_v7 = vmul.f32 %v3096_v30, %v2737_v12  ;;  %v472_v28 = vrot.slane %v363_v9, 1  ;;  %v895_v18 = vmul.f32 %v3173_v5, %v2739_v13 }
  0xb2   : > { %v716_v54 = vrot.slane %v607_v3, 2  ;;  %v969_v40 = vmul.f32 %v3173_v5, %v2741_v14  ;;  %v2056_v29 = vadd.f32 %v2840_v43, %v2018_v41  ;;  %v970_v20 = vmul.f32 %v3177_v61, %v2741_v14 }
  0xb3   : > { %v1170_v31 = vadd.f32 %v1076_v63, %v926_v19  ;;  %v717_v33 = vrot.slane %v608_v7, 2  ;;  %v473_v34 = vsel %vm440_vm0, %v471_v2, %v472_v28  ;;  %v1213_v26 = vmul.f32 %v3173_v5, %v2743_v15  ;;  %v3292_v7 = vld [vmem:[%s2721_s21 + $0xd0] sm:$0xff] }
  0xb4   : > { %v1077_v23 = vrot.slane %v969_v40, 1  ;;  %v1214_v60 = vmul.f32 %v3177_v61, %v2743_v15  ;;  %2088 = vst [vmem:[%s2863_s26 + $0x50] sm:$0xff] %v2056_v29  ;;  %v565_v24 = vadd.f32 %v473_v34, %v320_v0  ;;  %v1078_v47 = vrot.slane %v970_v20, 1 }
  0xb5   : > { %v1414_v37 = vadd.f32 %v1320_v44, %v1170_v31  ;;  %v718_v38 = vsel %vm685_vm1, %v716_v54, %v717_v33  ;;  %v1681_v36 = vsel %vm440_vm0, %v1678_v27, %v1680_v1  ;;  %v1321_v4 = vrot.slane %v1213_v26, 2 }
  0xb6   : > { %v1322_v6 = vrot.slane %v1214_v60, 2  ;;  %v1574_v51 = vmul.f32 %v3252_v48, %v2756_v22  ;;  %v1925_v53 = vsel %vm685_vm1, %v1922_v45, %v1924_v25  ;;  %v810_v21 = vadd.f32 %v718_v38, %v565_v24 }
  0xb7   : > { %v1531_v50 = vadd.f32 %v1499_v39, %v1414_v37  ;;  %v3263_v56 = vmul.f32 %v3256_v46, %v2756_v22  ;;  %v1079_v57 = vsel %vm440_vm0, %v1077_v23, %v1078_v47  ;;  %v1818_v27 = vmul.f32 %v3252_v48, %v2786_v49 }
  0xb8   : > { %v1682_v59 = vrot.slane %v1574_v51, 1  ;;  %v3270_v55 = vmul.f32 %v3256_v46, %v2786_v49  ;;  %v927_v35 = vadd.f32 %v895_v18, %v810_v21  ;;  %v1500_v45 = vmul.f32 %v3252_v48, %v2745_v16 }
  0xb9   : > { %v1775_v62 = vadd.f32 %v1681_v36, %v1531_v50  ;;  %v1683_v32 = vrot.slane %v3263_v56, 1  ;;  %v1323_v63 = vsel %vm685_vm1, %v1321_v4, %v1322_v6  ;;  %v321_v39 = vmul.f32 %v3096_v30, %v2733_v10 }
  0xba   : > { %v364_v8 = vmul.f32 %v3134_v17, %v2735_v11  ;;  %v609_v58 = vmul.f32 %v3134_v17, %v2737_v12  ;;  %v1171_v1 = vadd.f32 %v1079_v57, %v927_v35  ;;  %v1926_v0 = vrot.slane %v1818_v27, 2 }
  0xbb   : > { %v2019_v42 = vadd.f32 %v1925_v53, %v1775_v62  ;;  %v1927_v44 = vrot.slane %v3270_v55, 2  ;;  %v1684_v9 = vsel %vm440_vm0, %v1682_v59, %v1683_v32  ;;  %v971_v41 = vmul.f32 %v3213_v52, %v2741_v14 }
  0xbc   : > { %v474_v2 = vrot.slane %v364_v8, 1  ;;  %v719_v3 = vrot.slane %v609_v58, 2  ;;  %v1415_v19 = vadd.f32 %v1323_v63, %v1171_v1  ;;  %v896_v25 = vmul.f32 %v3177_v61, %v2739_v13 }
  0xbd   : > { %v2057_v30 = vadd.f32 %v2840_v43, %v2019_v42  ;;  %v1215_v17 = vmul.f32 %v3213_v52, %v2743_v15  ;;  %v1080_v40 = vrot.slane %v971_v41, 1  ;;  %v1576_v29 = vmul.f32 %v3292_v7, %v2756_v22 }
  0xbe   : > { %v475_v54 = vsel %vm440_vm0, %v472_v28, %v474_v2  ;;  %v720_v18 = vsel %vm685_vm1, %v717_v33, %v719_v3  ;;  %v1532_v31 = vadd.f32 %v1500_v45, %v1415_v19  ;;  %v1820_v23 = vmul.f32 %v3292_v7, %v2786_v49  ;;  %v3331_v2 = vld [vmem:[%s2721_s21 + $0xd8] sm:$0xff]  ;;  %v3335_v19 = vld [vmem:[%s2721_s21 + $0xe0] sm:$0xff] }
  0xbf   : > { %2089 = vst [vmem:[%s2863_s26 + $0x58] sm:$0xff] %v2057_v30  ;;  %v566_v20 = vadd.f32 %v475_v54, %v321_v39  ;;  %v1324_v34 = vrot.slane %v1215_v17, 2  ;;  %v1928_v26 = vsel %vm685_vm1, %v1926_v0, %v1927_v44  ;;  %v1081_v60 = vsel %vm440_vm0, %v1078_v47, %v1080_v40 }
  0xc0   : > { %v1501_v28 = vmul.f32 %v3256_v46, %v2745_v16  ;;  %v365_v33 = vmul.f32 %v3173_v5, %v2735_v11  ;;  %v1776_v37 = vadd.f32 %v1684_v9, %v1532_v31  ;;  %v1685_v38 = vrot.slane %v1576_v29, 1 }
  0xc1   : > { %v811_v24 = vadd.f32 %v720_v18, %v566_v20  ;;  %v322_v36 = vmul.f32 %v3173_v5, %v2733_v10  ;;  %v1325_v4 = vsel %vm685_vm1, %v1322_v6, %v1324_v34  ;;  %v366_v51 = vmul.f32 %v3177_v61, %v2735_v11 }
  0xc2   : > { %v476_v50 = vrot.slane %v365_v33, 1  ;;  %v610_v47 = vmul.f32 %v3173_v5, %v2737_v12  ;;  %v2020_v53 = vadd.f32 %v1928_v26, %v1776_v37  ;;  %v1929_v56 = vrot.slane %v1820_v23, 2 }
  0xc3   : > { %v928_v21 = vadd.f32 %v896_v25, %v811_v24  ;;  %v611_v57 = vmul.f32 %v3177_v61, %v2737_v12  ;;  %v477_v59 = vrot.slane %v366_v51, 1  ;;  %v897_v6 = vmul.f32 %v3252_v48, %v2739_v13 }
  0xc4   : > { %v721_v27 = vrot.slane %v610_v47, 2  ;;  %v972_v55 = vmul.f32 %v3252_v48, %v2741_v14  ;;  %v2058_v62 = vadd.f32 %v2840_v43, %v2020_v53  ;;  %v973_v45 = vmul.f32 %v3256_v46, %v2741_v14 }
  0xc5   : > { %v1172_v35 = vadd.f32 %v1081_v60, %v928_v21  ;;  %v722_v5 = vrot.slane %v611_v57, 2  ;;  %v478_v63 = vsel %vm440_vm0, %v476_v50, %v477_v59  ;;  %v1216_v8 = vmul.f32 %v3252_v48, %v2743_v15  ;;  %v3373_v57 = vld [vmem:[%s2721_s21 + $0xe8] sm:$0xff] }
  0xc6   : > { %v1082_v39 = vrot.slane %v972_v55, 1  ;;  %v1217_v58 = vmul.f32 %v3256_v46, %v2743_v15  ;;  %2090 = vst [vmem:[%s2863_s26 + $0x60] sm:$0xff] %v2058_v62  ;;  %v567_v1 = vadd.f32 %v478_v63, %v322_v36  ;;  %v1083_v9 = vrot.slane %v973_v45, 1 }
  0xc7   : > { %v1416_v42 = vadd.f32 %v1325_v4, %v1172_v35  ;;  %v723_v0 = vsel %vm685_vm1, %v721_v27, %v722_v5  ;;  %v1686_v3 = vsel %vm440_vm0, %v1683_v32, %v1685_v38  ;;  %v1326_v41 = vrot.slane %v1216_v8, 2 }
  0xc8   : > { %v1327_v30 = vrot.slane %v1217_v58, 2  ;;  %v1577_v25 = vmul.f32 %v3331_v2, %v2756_v22  ;;  %v1930_v54 = vsel %vm685_vm1, %v1927_v44, %v1929_v56  ;;  %v812_v18 = vadd.f32 %v723_v0, %v567_v1 }
  0xc9   : > { %v1533_v17 = vadd.f32 %v1501_v28, %v1416_v42  ;;  %v3342_v40 = vmul.f32 %v3335_v19, %v2756_v22  ;;  %v1084_v29 = vsel %vm440_vm0, %v1082_v39, %v1083_v9  ;;  %v1821_v32 = vmul.f32 %v3331_v2, %v2786_v49 }
  0xca   : > { %v1687_v31 = vrot.slane %v1577_v25, 1  ;;  %v3349_v20 = vmul.f32 %v3335_v19, %v2786_v49  ;;  %v929_v23 = vadd.f32 %v897_v6, %v812_v18  ;;  %v1502_v44 = vmul.f32 %v3331_v2, %v2745_v16 }
  0xcb   : > { %v1777_v34 = vadd.f32 %v1686_v3, %v1533_v17  ;;  %v1688_v26 = vrot.slane %v3342_v40, 1  ;;  %v1328_v60 = vsel %vm685_vm1, %v1326_v41, %v1327_v30  ;;  %v323_v28 = vmul.f32 %v3177_v61, %v2733_v10 }
  0xcc   : > { %v367_v33 = vmul.f32 %v3213_v52, %v2735_v11  ;;  %v612_v37 = vmul.f32 %v3213_v52, %v2737_v12  ;;  %v1173_v38 = vadd.f32 %v1084_v29, %v929_v23  ;;  %v1931_v36 = vrot.slane %v1821_v32, 2 }
  0xcd   : > { %v2021_v24 = vadd.f32 %v1930_v54, %v1777_v34  ;;  %v1932_v4 = vrot.slane %v3349_v20, 2  ;;  %v1689_v51 = vsel %vm440_vm0, %v1687_v31, %v1688_v26  ;;  %v974_v61 = vmul.f32 %v3292_v7, %v2741_v14 }
  0xce   : > { %v479_v50 = vrot.slane %v367_v33, 1  ;;  %v724_v47 = vrot.slane %v612_v37, 2  ;;  %v1417_v21 = vadd.f32 %v1328_v60, %v1173_v38  ;;  %v898_v52 = vmul.f32 %v3256_v46, %v2739_v13 }
  0xcf   : > { %v2059_v53 = vadd.f32 %v2840_v43, %v2021_v24  ;;  %v1218_v56 = vmul.f32 %v3292_v7, %v2743_v15  ;;  %v1085_v55 = vrot.slane %v974_v61, 1  ;;  %v1579_v62 = vmul.f32 %v3373_v57, %v2756_v22 }
  0xd0   : > { %v480_v27 = vsel %vm440_vm0, %v477_v59, %v479_v50  ;;  %v725_v6 = vsel %vm685_vm1, %v722_v5, %v724_v47  ;;  %v1534_v35 = vadd.f32 %v1502_v44, %v1417_v21  ;;  %v1823_v63 = vmul.f32 %v3373_v57, %v2786_v49  ;;  %v3417_v47 = vld [vmem:[%s2721_s21 + $0xf0] sm:$0xff] }
  0xd1   : > { %2091 = vst [vmem:[%s2863_s26 + $0x68] sm:$0xff] %v2059_v53  ;;  %v568_v43 = vadd.f32 %v480_v27, %v323_v28  ;;  %v1329_v45 = vrot.slane %v1218_v56, 2  ;;  %v1933_v39 = vsel %vm685_vm1, %v1931_v36, %v1932_v4  ;;  %v1086_v8 = vsel %vm440_vm0, %v1083_v9, %v1085_v55 }
  0xd2   : > { %v1503_v59 = vmul.f32 %v3335_v19, %v2745_v16  ;;  %v368_v5 = vmul.f32 %v3252_v48, %v2735_v11  ;;  %v1778_v58 = vadd.f32 %v1689_v51, %v1534_v35  ;;  %v1690_v1 = vrot.slane %v1579_v62, 1 }
  0xd3   : > { %v813_v42 = vadd.f32 %v725_v6, %v568_v43  ;;  %v324_v0 = vmul.f32 %v3252_v48, %v2733_v10  ;;  %v1330_v3 = vsel %vm685_vm1, %v1327_v30, %v1329_v45  ;;  %v369_v41 = vmul.f32 %v3256_v46, %v2735_v11 }
  0xd4   : > { %v481_v25 = vrot.slane %v368_v5, 1  ;;  %v613_v9 = vmul.f32 %v3252_v48, %v2737_v12  ;;  %v2022_v17 = vadd.f32 %v1933_v39, %v1778_v58  ;;  %v1934_v18 = vrot.slane %v1823_v63, 2  ;;  %v3404_v48 = vld [vmem:[%s4082_s2] ss:$0 sm:$0xff] }
  0xd5   : > { %v930_v54 = vadd.f32 %v898_v52, %v813_v42  ;;  %v614_v29 = vmul.f32 %v3256_v46, %v2737_v12  ;;  %v482_v31 = vrot.slane %v369_v41, 1  ;;  %v899_v20 = vmul.f32 %v3331_v2, %v2739_v13  ;;  %v3423_v52 = vld [vmem:[%s2721_s21 + $0xf8] sm:$0xff] }
  0xd6   : > { %v726_v32 = vrot.slane %v613_v9, 2  ;;  %v975_v30 = vmul.f32 %v3331_v2, %v2741_v14  ;;  %v2060_v34 = vadd.f32 %v3404_v48, %v2022_v17  ;;  %v976_v60 = vmul.f32 %v3335_v19, %v2741_v14 }
  0xd7   : > { %v1174_v23 = vadd.f32 %v1086_v8, %v930_v54  ;;  %v727_v44 = vrot.slane %v614_v29, 2  ;;  %v483_v28 = vsel %vm440_vm0, %v481_v25, %v482_v31  ;;  %v1219_v37 = vmul.f32 %v3331_v2, %v2743_v15  ;;  %v3459_v29 = vld [vmem:[%s2721_s21 + $0x100] sm:$0xff] }
  0xd8   : > { %v1087_v33 = vrot.slane %v975_v30, 1  ;;  %v1220_v24 = vmul.f32 %v3335_v19, %v2743_v15  ;;  %2092 = vst [vmem:[%s2863_s26 + $0x70] sm:$0xff] %v2060_v34  ;;  %v569_v36 = vadd.f32 %v483_v28, %v324_v0  ;;  %v1088_v50 = vrot.slane %v976_v60, 1 }
  0xd9   : > { %v1418_v38 = vadd.f32 %v1330_v3, %v1174_v23  ;;  %v728_v51 = vsel %vm685_vm1, %v726_v32, %v727_v44  ;;  %v1691_v61 = vsel %vm440_vm0, %v1688_v26, %v1690_v1  ;;  %v1331_v53 = vrot.slane %v1219_v37, 2 }
  0xda   : > { %v1332_v21 = vrot.slane %v1220_v24, 2  ;;  %v1580_v56 = vmul.f32 %v3417_v47, %v2756_v22  ;;  %v1935_v6 = vsel %vm685_vm1, %v1932_v4, %v1934_v18  ;;  %v814_v55 = vadd.f32 %v728_v51, %v569_v36 }
  0xdb   : > { %v1535_v27 = vadd.f32 %v1503_v59, %v1418_v38  ;;  %v3430_v62 = vmul.f32 %v3423_v52, %v2756_v22  ;;  %v1089_v35 = vsel %vm440_vm0, %v1087_v33, %v1088_v50  ;;  %v1824_v26 = vmul.f32 %v3417_v47, %v2786_v49 }
  0xdc   : > { %v1692_v40 = vrot.slane %v1580_v56, 1  ;;  %v3437_v43 = vmul.f32 %v3423_v52, %v2786_v49  ;;  %v931_v63 = vadd.f32 %v899_v20, %v814_v55  ;;  %v1504_v4 = vmul.f32 %v3417_v47, %v2745_v16 }
  0xdd   : > { %v1779_v45 = vadd.f32 %v1691_v61, %v1535_v27  ;;  %v1693_v39 = vrot.slane %v3430_v62, 1  ;;  %v1333_v8 = vsel %vm685_vm1, %v1331_v53, %v1332_v21  ;;  %v325_v59 = vmul.f32 %v3256_v46, %v2733_v10 }
  0xde   : > { %v370_v5 = vmul.f32 %v3292_v7, %v2735_v11  ;;  %v615_v58 = vmul.f32 %v3292_v7, %v2737_v12  ;;  %v1175_v1 = vadd.f32 %v1089_v35, %v931_v63  ;;  %v1936_v0 = vrot.slane %v1824_v26, 2 }
  0xdf   : > { %v2023_v42 = vadd.f32 %v1935_v6, %v1779_v45  ;;  %v1937_v3 = vrot.slane %v3437_v43, 2  ;;  %v1694_v41 = vsel %vm440_vm0, %v1692_v40, %v1693_v39  ;;  %v977_v17 = vmul.f32 %v3373_v57, %v2741_v14 }
  0xe0   : > { %v484_v25 = vrot.slane %v370_v5, 1  ;;  %v729_v9 = vrot.slane %v615_v58, 2  ;;  %v1419_v54 = vadd.f32 %v1333_v8, %v1175_v1  ;;  %v900_v18 = vmul.f32 %v3335_v19, %v2739_v13 }
  0xe1   : > { %v2061_v46 = vadd.f32 %v3404_v48, %v2023_v42  ;;  %v1221_v7 = vmul.f32 %v3373_v57, %v2743_v15  ;;  %v1090_v30 = vrot.slane %v977_v17, 1  ;;  %v1582_v34 = vmul.f32 %v3459_v29, %v2756_v22 }
  0xe2   : > { %v485_v32 = vsel %vm440_vm0, %v482_v31, %v484_v25  ;;  %v730_v20 = vsel %vm685_vm1, %v727_v44, %v729_v9  ;;  %v1536_v23 = vadd.f32 %v1504_v4, %v1419_v54  ;;  %v1826_v33 = vmul.f32 %v3459_v29, %v2786_v49  ;;  %v3498_v25 = vld [vmem:[%s2721_s21 + $0x108] sm:$0xff]  ;;  %v3502_v54 = vld [vmem:[%s2721_s21 + $0x110] sm:$0xff] }
  0xe3   : > { %2093 = vst [vmem:[%s2863_s26 + $0x78] sm:$0xff] %v2061_v46  ;;  %v570_v60 = vadd.f32 %v485_v32, %v325_v59  ;;  %v1334_v28 = vrot.slane %v1221_v7, 2  ;;  %v1938_v37 = vsel %vm685_vm1, %v1936_v0, %v1937_v3  ;;  %v1091_v24 = vsel %vm440_vm0, %v1088_v50, %v1090_v30 }
  0xe4   : > { %v1505_v31 = vmul.f32 %v3423_v52, %v2745_v16  ;;  %v371_v44 = vmul.f32 %v3331_v2, %v2735_v11  ;;  %v1780_v38 = vadd.f32 %v1694_v41, %v1536_v23  ;;  %v1695_v51 = vrot.slane %v1582_v34, 1 }
  0xe5   : > { %v815_v36 = vadd.f32 %v730_v20, %v570_v60  ;;  %v326_v61 = vmul.f32 %v3331_v2, %v2733_v10  ;;  %v1335_v53 = vsel %vm685_vm1, %v1332_v21, %v1334_v28  ;;  %v372_v56 = vmul.f32 %v3335_v19, %v2735_v11 }
  0xe6   : > { %v486_v27 = vrot.slane %v371_v44, 1  ;;  %v616_v50 = vmul.f32 %v3331_v2, %v2737_v12  ;;  %v2024_v6 = vadd.f32 %v1938_v37, %v1780_v38  ;;  %v1939_v62 = vrot.slane %v1826_v33, 2 }
  0xe7   : > { %v932_v55 = vadd.f32 %v900_v18, %v815_v36  ;;  %v617_v35 = vmul.f32 %v3335_v19, %v2737_v12  ;;  %v487_v40 = vrot.slane %v372_v56, 1  ;;  %v901_v21 = vmul.f32 %v3417_v47, %v2739_v13 }
  0xe8   : > { %v731_v26 = vrot.slane %v616_v50, 2  ;;  %v978_v43 = vmul.f32 %v3417_v47, %v2741_v14  ;;  %v2062_v45 = vadd.f32 %v3404_v48, %v2024_v6  ;;  %v979_v4 = vmul.f32 %v3423_v52, %v2741_v14 }
  0xe9   : > { %v1176_v63 = vadd.f32 %v1091_v24, %v932_v55  ;;  %v732_v2 = vrot.slane %v617_v35, 2  ;;  %v488_v8 = vsel %vm440_vm0, %v486_v27, %v487_v40  ;;  %v1222_v5 = vmul.f32 %v3417_v47, %v2743_v15  ;;  %v3538_v35 = vld [vmem:[%s2721_s21 + $0x118] sm:$0xff] }
  0xea   : > { %v1092_v59 = vrot.slane %v978_v43, 1  ;;  %v1223_v58 = vmul.f32 %v3423_v52, %v2743_v15  ;;  %2094 = vst [vmem:[%s2863_s26 + $0x80] sm:$0xff] %v2062_v45  ;;  %v571_v1 = vadd.f32 %v488_v8, %v326_v61  ;;  %v1093_v41 = vrot.slane %v979_v4, 1 }
  0xeb   : > { %v1420_v42 = vadd.f32 %v1335_v53, %v1176_v63  ;;  %v733_v0 = vsel %vm685_vm1, %v731_v26, %v732_v2  ;;  %v1696_v9 = vsel %vm440_vm0, %v1693_v39, %v1695_v51  ;;  %v1336_v17 = vrot.slane %v1222_v5, 2 }
  0xec   : > { %v1337_v46 = vrot.slane %v1223_v58, 2  ;;  %v1583_v18 = vmul.f32 %v3498_v25, %v2756_v22  ;;  %v1940_v32 = vsel %vm685_vm1, %v1937_v3, %v1939_v62  ;;  %v816_v20 = vadd.f32 %v733_v0, %v571_v1 }
  0xed   : > { %v1537_v7 = vadd.f32 %v1505_v31, %v1420_v42  ;;  %v3509_v30 = vmul.f32 %v3502_v54, %v2756_v22  ;;  %v1094_v34 = vsel %vm440_vm0, %v1092_v59, %v1093_v41  ;;  %v1827_v39 = vmul.f32 %v3498_v25, %v2786_v49 }
  0xee   : > { %v1697_v23 = vrot.slane %v1583_v18, 1  ;;  %v3516_v60 = vmul.f32 %v3502_v54, %v2786_v49  ;;  %v933_v33 = vadd.f32 %v901_v21, %v816_v20  ;;  %v1506_v3 = vmul.f32 %v3498_v25, %v2745_v16 }
  0xef   : > { %v1781_v28 = vadd.f32 %v1696_v9, %v1537_v7  ;;  %v1698_v37 = vrot.slane %v3509_v30, 1  ;;  %v1338_v24 = vsel %vm685_vm1, %v1336_v17, %v1337_v46  ;;  %v327_v31 = vmul.f32 %v3335_v19, %v2733_v10 }
  0xf0   : > { %v373_v44 = vmul.f32 %v3373_v57, %v2735_v11  ;;  %v618_v38 = vmul.f32 %v3373_v57, %v2737_v12  ;;  %v1177_v51 = vadd.f32 %v1094_v34, %v933_v33  ;;  %v1941_v61 = vrot.slane %v1827_v39, 2 }
  0xf1   : > { %v2025_v36 = vadd.f32 %v1940_v32, %v1781_v28  ;;  %v1942_v53 = vrot.slane %v3516_v60, 2  ;;  %v1699_v56 = vsel %vm440_vm0, %v1697_v23, %v1698_v37  ;;  %v980_v6 = vmul.f32 %v3459_v29, %v2741_v14 }
  0xf2   : > { %v489_v27 = vrot.slane %v373_v44, 1  ;;  %v734_v50 = vrot.slane %v618_v38, 2  ;;  %v1421_v55 = vadd.f32 %v1338_v24, %v1177_v51  ;;  %v902_v62 = vmul.f32 %v3423_v52, %v2739_v13 }
  0xf3   : > { %v2063_v19 = vadd.f32 %v3404_v48, %v2025_v36  ;;  %v1224_v57 = vmul.f32 %v3459_v29, %v2743_v15  ;;  %v1095_v43 = vrot.slane %v980_v6, 1  ;;  %v1585_v45 = vmul.f32 %v3538_v35, %v2756_v22 }
  0xf4   : > { %v490_v26 = vsel %vm440_vm0, %v487_v40, %v489_v27  ;;  %v735_v21 = vsel %vm685_vm1, %v732_v2, %v734_v50  ;;  %v1538_v63 = vadd.f32 %v1506_v3, %v1421_v55  ;;  %v1829_v59 = vmul.f32 %v3538_v35, %v2786_v49  ;;  %v3577_v27 = vld [vmem:[%s2721_s21 + $0x120] sm:$0xff]  ;;  %v3581_v55 = vld [vmem:[%s2721_s21 + $0x128] sm:$0xff] }
  0xf5   : > { %2095 = vst [vmem:[%s2863_s26 + $0x88] sm:$0xff] %v2063_v19  ;;  %v572_v4 = vadd.f32 %v490_v26, %v327_v31  ;;  %v1339_v8 = vrot.slane %v1224_v57, 2  ;;  %v1943_v5 = vsel %vm685_vm1, %v1941_v61, %v1942_v53  ;;  %v1096_v58 = vsel %vm440_vm0, %v1093_v41, %v1095_v43 }
  0xf6   : > { %v1507_v40 = vmul.f32 %v3502_v54, %v2745_v16  ;;  %v374_v2 = vmul.f32 %v3417_v47, %v2735_v11  ;;  %v1782_v42 = vadd.f32 %v1699_v56, %v1538_v63  ;;  %v1700_v0 = vrot.slane %v1585_v45, 1 }
  0xf7   : > { %v817_v1 = vadd.f32 %v735_v21, %v572_v4  ;;  %v328_v9 = vmul.f32 %v3417_v47, %v2733_v10  ;;  %v1340_v17 = vsel %vm685_vm1, %v1337_v46, %v1339_v8  ;;  %v375_v18 = vmul.f32 %v3423_v52, %v2735_v11 }
  0xf8   : > { %v491_v7 = vrot.slane %v374_v2, 1  ;;  %v619_v41 = vmul.f32 %v3417_v47, %v2737_v12  ;;  %v2026_v32 = vadd.f32 %v1943_v5, %v1782_v42  ;;  %v1944_v30 = vrot.slane %v1829_v59, 2 }
  0xf9   : > { %v934_v20 = vadd.f32 %v902_v62, %v817_v1  ;;  %v620_v34 = vmul.f32 %v3423_v52, %v2737_v12  ;;  %v492_v23 = vrot.slane %v375_v18, 1  ;;  %v903_v46 = vmul.f32 %v3498_v25, %v2739_v13 }
  0xfa   : > { %v736_v39 = vrot.slane %v619_v41, 2  ;;  %v981_v60 = vmul.f32 %v3498_v25, %v2741_v14  ;;  %v2064_v28 = vadd.f32 %v3404_v48, %v2026_v32  ;;  %v982_v3 = vmul.f32 %v3502_v54, %v2741_v14 }
  0xfb   : > { %v1178_v33 = vadd.f32 %v1096_v58, %v934_v20  ;;  %v737_v47 = vrot.slane %v620_v34, 2  ;;  %v493_v24 = vsel %vm440_vm0, %v491_v7, %v492_v23  ;;  %v1225_v44 = vmul.f32 %v3498_v25, %v2743_v15  ;;  %v3617_v34 = vld [vmem:[%s2721_s21 + $0x130] sm:$0xff] }
  0xfc   : > { %v1097_v31 = vrot.slane %v981_v60, 1  ;;  %v1226_v38 = vmul.f32 %v3502_v54, %v2743_v15  ;;  %2096 = vst [vmem:[%s2863_s26 + $0x90] sm:$0xff] %v2064_v28  ;;  %v573_v51 = vadd.f32 %v493_v24, %v328_v9  ;;  %v1098_v56 = vrot.slane %v982_v3, 1 }
  0xfd   : > { %v1422_v36 = vadd.f32 %v1340_v17, %v1178_v33  ;;  %v738_v61 = vsel %vm685_vm1, %v736_v39, %v737_v47  ;;  %v1701_v50 = vsel %vm440_vm0, %v1698_v37, %v1700_v0  ;;  %v1341_v6 = vrot.slane %v1225_v44, 2 }
  0xfe   : > { %v1342_v19 = vrot.slane %v1226_v38, 2  ;;  %v1586_v62 = vmul.f32 %v3577_v27, %v2756_v22  ;;  %v1945_v26 = vsel %vm685_vm1, %v1942_v53, %v1944_v30  ;;  %v818_v21 = vadd.f32 %v738_v61, %v573_v51 }
  0xff   : > { %v1539_v57 = vadd.f32 %v1507_v40, %v1422_v36  ;;  %v3588_v43 = vmul.f32 %v3581_v55, %v2756_v22  ;;  %v1099_v45 = vsel %vm440_vm0, %v1097_v31, %v1098_v56  ;;  %v1830_v37 = vmul.f32 %v3577_v27, %v2786_v49 }
 0x100   : > { %v1702_v63 = vrot.slane %v1586_v62, 1  ;;  %v3595_v4 = vmul.f32 %v3581_v55, %v2786_v49  ;;  %v935_v59 = vadd.f32 %v903_v46, %v818_v21  ;;  %v1508_v53 = vmul.f32 %v3577_v27, %v2745_v16 }
 0x101   : > { %v1783_v8 = vadd.f32 %v1701_v50, %v1539_v57  ;;  %v1703_v5 = vrot.slane %v3588_v43, 1  ;;  %v1343_v58 = vsel %vm685_vm1, %v1341_v6, %v1342_v19  ;;  %v329_v40 = vmul.f32 %v3423_v52, %v2733_v10 }
 0x102   : > { %v376_v2 = vmul.f32 %v3459_v29, %v2735_v11  ;;  %v621_v42 = vmul.f32 %v3459_v29, %v2737_v12  ;;  %v1179_v0 = vadd.f32 %v1099_v45, %v935_v59  ;;  %v1946_v9 = vrot.slane %v1830_v37, 2 }
 0x103   : > { %v2027_v1 = vadd.f32 %v1945_v26, %v1783_v8  ;;  %v1947_v17 = vrot.slane %v3595_v4, 2  ;;  %v1704_v18 = vsel %vm440_vm0, %v1702_v63, %v1703_v5  ;;  %v983_v32 = vmul.f32 %v3538_v35, %v2741_v14 }
 0x104   : > { %v494_v7 = vrot.slane %v376_v2, 1  ;;  %v739_v41 = vrot.slane %v621_v42, 2  ;;  %v1423_v20 = vadd.f32 %v1343_v58, %v1179_v0  ;;  %v904_v30 = vmul.f32 %v3502_v54, %v2739_v13 }
 0x105   : > { %v2065_v52 = vadd.f32 %v3404_v48, %v2027_v1  ;;  %v1227_v29 = vmul.f32 %v3538_v35, %v2743_v15  ;;  %v1100_v60 = vrot.slane %v983_v32, 1  ;;  %v1588_v28 = vmul.f32 %v3617_v34, %v2756_v22 }
 0x106   : > { %v495_v39 = vsel %vm440_vm0, %v492_v23, %v494_v7  ;;  %v740_v46 = vsel %vm685_vm1, %v737_v47, %v739_v41  ;;  %v1540_v33 = vadd.f32 %v1508_v53, %v1423_v20  ;;  %v1832_v31 = vmul.f32 %v3617_v34, %v2786_v49  ;;  %v3656_v7 = vld [vmem:[%s2721_s21 + $0x138] sm:$0xff]  ;;  %v3660_v20 = vld [vmem:[%s2721_s21 + $0x140] sm:$0xff] }
 0x107   : > { %2097 = vst [vmem:[%s2863_s26 + $0x98] sm:$0xff] %v2065_v52  ;;  %v574_v3 = vadd.f32 %v495_v39, %v329_v40  ;;  %v1344_v24 = vrot.slane %v1227_v29, 2  ;;  %v1948_v44 = vsel %vm685_vm1, %v1946_v9, %v1947_v17  ;;  %v1101_v38 = vsel %vm440_vm0, %v1098_v56, %v1100_v60 }
 0x108   : > { %v1509_v23 = vmul.f32 %v3581_v55, %v2745_v16  ;;  %v377_v47 = vmul.f32 %v3498_v25, %v2735_v11  ;;  %v1784_v36 = vadd.f32 %v1704_v18, %v1540_v33  ;;  %v1705_v61 = vrot.slane %v1588_v28, 1 }
 0x109   : > { %v819_v51 = vadd.f32 %v740_v46, %v574_v3  ;;  %v330_v50 = vmul.f32 %v3498_v25, %v2733_v10  ;;  %v1345_v6 = vsel %vm685_vm1, %v1342_v19, %v1344_v24  ;;  %v378_v62 = vmul.f32 %v3502_v54, %v2735_v11 }
 0x10a   : > { %v496_v57 = vrot.slane %v377_v47, 1  ;;  %v622_v56 = vmul.f32 %v3498_v25, %v2737_v12  ;;  %v2028_v26 = vadd.f32 %v1948_v44, %v1784_v36  ;;  %v1949_v43 = vrot.slane %v1832_v31, 2 }
 0x10b   : > { %v936_v21 = vadd.f32 %v904_v30, %v819_v51  ;;  %v623_v45 = vmul.f32 %v3502_v54, %v2737_v12  ;;  %v497_v63 = vrot.slane %v378_v62, 1  ;;  %v905_v19 = vmul.f32 %v3577_v27, %v2739_v13 }
 0x10c   : > { %v741_v37 = vrot.slane %v622_v56, 2  ;;  %v984_v4 = vmul.f32 %v3577_v27, %v2741_v14  ;;  %v2066_v8 = vadd.f32 %v3404_v48, %v2028_v26  ;;  %v985_v53 = vmul.f32 %v3581_v55, %v2741_v14 }
 0x10d   : > { %v1180_v59 = vadd.f32 %v1101_v38, %v936_v21  ;;  %v742_v25 = vrot.slane %v623_v45, 2  ;;  %v498_v58 = vsel %vm440_vm0, %v496_v57, %v497_v63  ;;  %v1228_v2 = vmul.f32 %v3577_v27, %v2743_v15  ;;  %v3696_v45 = vld [vmem:[%s2721_s21 + $0x148] sm:$0xff] }
 0x10e   : > { %v1102_v40 = vrot.slane %v984_v4, 1  ;;  %v1229_v42 = vmul.f32 %v3581_v55, %v2743_v15  ;;  %2098 = vst [vmem:[%s2863_s26 + $0xa0] sm:$0xff] %v2066_v8  ;;  %v575_v0 = vadd.f32 %v498_v58, %v330_v50  ;;  %v1103_v18 = vrot.slane %v985_v53, 1 }
 0x10f   : > { %v1424_v1 = vadd.f32 %v1345_v6, %v1180_v59  ;;  %v743_v9 = vsel %vm685_vm1, %v741_v37, %v742_v25  ;;  %v1706_v41 = vsel %vm440_vm0, %v1703_v5, %v1705_v61  ;;  %v1346_v32 = vrot.slane %v1228_v2, 2 }
 0x110   : > { %v1347_v52 = vrot.slane %v1229_v42, 2  ;;  %v1589_v30 = vmul.f32 %v3656_v7, %v2756_v22  ;;  %v1950_v39 = vsel %vm685_vm1, %v1947_v17, %v1949_v43  ;;  %v820_v46 = vadd.f32 %v743_v9, %v575_v0 }
 0x111   : > { %v1541_v29 = vadd.f32 %v1509_v23, %v1424_v1  ;;  %v3667_v60 = vmul.f32 %v3660_v20, %v2756_v22  ;;  %v1104_v28 = vsel %vm440_vm0, %v1102_v40, %v1103_v18  ;;  %v1833_v5 = vmul.f32 %v3656_v7, %v2786_v49 }
 0x112   : > { %v1707_v33 = vrot.slane %v1589_v30, 1  ;;  %v3674_v3 = vmul.f32 %v3660_v20, %v2786_v49  ;;  %v937_v31 = vadd.f32 %v905_v19, %v820_v46  ;;  %v1510_v17 = vmul.f32 %v3656_v7, %v2745_v16 }
 0x113   : > { %v1785_v24 = vadd.f32 %v1706_v41, %v1541_v29  ;;  %v1708_v44 = vrot.slane %v3667_v60, 1  ;;  %v1348_v38 = vsel %vm685_vm1, %v1346_v32, %v1347_v52  ;;  %v331_v23 = vmul.f32 %v3502_v54, %v2733_v10 }
 0x114   : > { %v379_v47 = vmul.f32 %v3538_v35, %v2735_v11  ;;  %v624_v36 = vmul.f32 %v3538_v35, %v2737_v12  ;;  %v1181_v61 = vadd.f32 %v1104_v28, %v937_v31  ;;  %v1951_v50 = vrot.slane %v1833_v5, 2 }
 0x115   : > { %v2029_v51 = vadd.f32 %v1950_v39, %v1785_v24  ;;  %v1952_v6 = vrot.slane %v3674_v3, 2  ;;  %v1709_v62 = vsel %vm440_vm0, %v1707_v33, %v1708_v44  ;;  %v986_v26 = vmul.f32 %v3617_v34, %v2741_v14 }
 0x116   : > { %v499_v57 = vrot.slane %v379_v47, 1  ;;  %v744_v56 = vrot.slane %v624_v36, 2  ;;  %v1425_v21 = vadd.f32 %v1348_v38, %v1181_v61  ;;  %v906_v43 = vmul.f32 %v3581_v55, %v2739_v13 }
 0x117   : > { %v2067_v54 = vadd.f32 %v3404_v48, %v2029_v51  ;;  %v1230_v35 = vmul.f32 %v3617_v34, %v2743_v15  ;;  %v1105_v4 = vrot.slane %v986_v26, 1  ;;  %v1591_v8 = vmul.f32 %v3696_v45, %v2756_v22 }
 0x118   : > { %v500_v37 = vsel %vm440_vm0, %v497_v63, %v499_v57  ;;  %v745_v19 = vsel %vm685_vm1, %v742_v25, %v744_v56  ;;  %v1542_v59 = vadd.f32 %v1510_v17, %v1425_v21  ;;  %v1835_v40 = vmul.f32 %v3696_v45, %v2786_v49  ;;  %v3735_v57 = vld [vmem:[%s2721_s21 + $0x150] sm:$0xff]  ;;  %v3739_v21 = vld [vmem:[%s2721_s21 + $0x158] sm:$0xff] }
 0x119   : > { %2099 = vst [vmem:[%s2863_s26 + $0xa8] sm:$0xff] %v2067_v54  ;;  %v576_v53 = vadd.f32 %v500_v37, %v331_v23  ;;  %v1349_v58 = vrot.slane %v1230_v35, 2  ;;  %v1953_v2 = vsel %vm685_vm1, %v1951_v50, %v1952_v6  ;;  %v1106_v42 = vsel %vm440_vm0, %v1103_v18, %v1105_v4 }
 0x11a   : > { %v1511_v63 = vmul.f32 %v3660_v20, %v2745_v16  ;;  %v380_v25 = vmul.f32 %v3577_v27, %v2735_v11  ;;  %v1786_v1 = vadd.f32 %v1709_v62, %v1542_v59  ;;  %v1710_v9 = vrot.slane %v1591_v8, 1 }
 0x11b   : > { %v821_v0 = vadd.f32 %v745_v19, %v576_v53  ;;  %v332_v41 = vmul.f32 %v3577_v27, %v2733_v10  ;;  %v1350_v32 = vsel %vm685_vm1, %v1347_v52, %v1349_v58  ;;  %v381_v30 = vmul.f32 %v3581_v55, %v2735_v11 }
 0x11c   : > { %v501_v29 = vrot.slane %v380_v25, 1  ;;  %v625_v18 = vmul.f32 %v3577_v27, %v2737_v12  ;;  %v2030_v39 = vadd.f32 %v1953_v2, %v1786_v1  ;;  %v1954_v60 = vrot.slane %v1835_v40, 2 }
 0x11d   : > { %v938_v46 = vadd.f32 %v906_v43, %v821_v0  ;;  %v626_v28 = vmul.f32 %v3581_v55, %v2737_v12  ;;  %v502_v33 = vrot.slane %v381_v30, 1  ;;  %v907_v52 = vmul.f32 %v3656_v7, %v2739_v13 }
 0x11e   : > { %v746_v5 = vrot.slane %v625_v18, 2  ;;  %v987_v3 = vmul.f32 %v3656_v7, %v2741_v14  ;;  %v2068_v24 = vadd.f32 %v3404_v48, %v2030_v39  ;;  %v988_v17 = vmul.f32 %v3660_v20, %v2741_v14 }
 0x11f   : > { %v1182_v31 = vadd.f32 %v1106_v42, %v938_v46  ;;  %v747_v27 = vrot.slane %v626_v28, 2  ;;  %v503_v38 = vsel %vm440_vm0, %v501_v29, %v502_v33  ;;  %v1231_v47 = vmul.f32 %v3656_v7, %v2743_v15  ;;  %v3775_v28 = vld [vmem:[%s2721_s21 + $0x160] sm:$0xff] }
 0x120   : > { %v1107_v23 = vrot.slane %v987_v3, 1  ;;  %v1232_v36 = vmul.f32 %v3660_v20, %v2743_v15  ;;  %2100 = vst [vmem:[%s2863_s26 + $0xb0] sm:$0xff] %v2068_v24  ;;  %v577_v61 = vadd.f32 %v503_v38, %v332_v41  ;;  %v1108_v62 = vrot.slane %v988_v17, 1 }
 0x121   : > { %v1426_v51 = vadd.f32 %v1350_v32, %v1182_v31  ;;  %v748_v50 = vsel %vm685_vm1, %v746_v5, %v747_v27  ;;  %v1711_v56 = vsel %vm440_vm0, %v1708_v44, %v1710_v9  ;;  %v1351_v26 = vrot.slane %v1231_v47, 2 }
 0x122   : > { %v1352_v54 = vrot.slane %v1232_v36, 2  ;;  %v1592_v43 = vmul.f32 %v3735_v57, %v2756_v22  ;;  %v1955_v37 = vsel %vm685_vm1, %v1952_v6, %v1954_v60  ;;  %v822_v19 = vadd.f32 %v748_v50, %v577_v61 }
 0x123   : > { %v1543_v35 = vadd.f32 %v1511_v63, %v1426_v51  ;;  %v3746_v4 = vmul.f32 %v3739_v21, %v2756_v22  ;;  %v1109_v8 = vsel %vm440_vm0, %v1107_v23, %v1108_v62  ;;  %v1836_v44 = vmul.f32 %v3735_v57, %v2786_v49 }
 0x124   : > { %v1712_v59 = vrot.slane %v1592_v43, 1  ;;  %v3753_v53 = vmul.f32 %v3739_v21, %v2786_v49  ;;  %v939_v40 = vadd.f32 %v907_v52, %v822_v19  ;;  %v1512_v6 = vmul.f32 %v3735_v57, %v2745_v16 }
 0x125   : > { %v1787_v58 = vadd.f32 %v1711_v56, %v1543_v35  ;;  %v1713_v2 = vrot.slane %v3746_v4, 1  ;;  %v1353_v42 = vsel %vm685_vm1, %v1351_v26, %v1352_v54  ;;  %v333_v63 = vmul.f32 %v3581_v55, %v2733_v10 }
 0x126   : > { %v382_v25 = vmul.f32 %v3617_v34, %v2735_v11  ;;  %v627_v1 = vmul.f32 %v3617_v34, %v2737_v12  ;;  %v1183_v9 = vadd.f32 %v1109_v8, %v939_v40  ;;  %v1956_v41 = vrot.slane %v1836_v44, 2 }
 0x127   : > { %v2031_v0 = vadd.f32 %v1955_v37, %v1787_v58  ;;  %v1957_v32 = vrot.slane %v3753_v53, 2  ;;  %v1714_v30 = vsel %vm440_vm0, %v1712_v59, %v1713_v2  ;;  %v989_v39 = vmul.f32 %v3696_v45, %v2741_v14 }
 0x128   : > { %v504_v29 = vrot.slane %v382_v25, 1  ;;  %v749_v18 = vrot.slane %v627_v1, 2  ;;  %v1427_v46 = vadd.f32 %v1353_v42, %v1183_v9  ;;  %v908_v60 = vmul.f32 %v3660_v20, %v2739_v13 }
 0x129   : > { %v2069_v55 = vadd.f32 %v3404_v48, %v2031_v0  ;;  %v1233_v34 = vmul.f32 %v3696_v45, %v2743_v15  ;;  %v1110_v3 = vrot.slane %v989_v39, 1  ;;  %v1594_v24 = vmul.f32 %v3775_v28, %v2756_v22 }
 0x12a   : > { %v505_v5 = vsel %vm440_vm0, %v502_v33, %v504_v29  ;;  %v750_v52 = vsel %vm685_vm1, %v747_v27, %v749_v18  ;;  %v1544_v31 = vadd.f32 %v1512_v6, %v1427_v46  ;;  %v1838_v23 = vmul.f32 %v3775_v28, %v2786_v49  ;;  %v3814_v29 = vld [vmem:[%s2721_s21 + $0x168] sm:$0xff]  ;;  %v3818_v46 = vld [vmem:[%s2721_s21 + $0x170] sm:$0xff] }
 0x12b   : > { %2101 = vst [vmem:[%s2863_s26 + $0xb8] sm:$0xff] %v2069_v55  ;;  %v578_v17 = vadd.f32 %v505_v5, %v333_v63  ;;  %v1354_v38 = vrot.slane %v1233_v34, 2  ;;  %v1958_v47 = vsel %vm685_vm1, %v1956_v41, %v1957_v32  ;;  %v1111_v36 = vsel %vm440_vm0, %v1108_v62, %v1110_v3 }
 0x12c   : > { %v1513_v33 = vmul.f32 %v3739_v21, %v2745_v16  ;;  %v383_v27 = vmul.f32 %v3656_v7, %v2735_v11  ;;  %v1788_v51 = vadd.f32 %v1714_v30, %v1544_v31  ;;  %v1715_v50 = vrot.slane %v1594_v24, 1 }
 0x12d   : > { %v823_v61 = vadd.f32 %v750_v52, %v578_v17  ;;  %v334_v56 = vmul.f32 %v3656_v7, %v2733_v10  ;;  %v1355_v26 = vsel %vm685_vm1, %v1352_v54, %v1354_v38  ;;  %v384_v43 = vmul.f32 %v3660_v20, %v2735_v11 }
 0x12e   : > { %v506_v35 = vrot.slane %v383_v27, 1  ;;  %v628_v62 = vmul.f32 %v3656_v7, %v2737_v12  ;;  %v2032_v37 = vadd.f32 %v1958_v47, %v1788_v51  ;;  %v1959_v4 = vrot.slane %v1838_v23, 2 }
 0x12f   : > { %v940_v19 = vadd.f32 %v908_v60, %v823_v61  ;;  %v629_v8 = vmul.f32 %v3660_v20, %v2737_v12  ;;  %v507_v59 = vrot.slane %v384_v43, 1  ;;  %v909_v54 = vmul.f32 %v3735_v57, %v2739_v13 }
 0x130   : > { %v751_v44 = vrot.slane %v628_v62, 2  ;;  %v990_v53 = vmul.f32 %v3735_v57, %v2741_v14  ;;  %v2070_v58 = vadd.f32 %v3404_v48, %v2032_v37  ;;  %v991_v6 = vmul.f32 %v3739_v21, %v2741_v14 }
 0x131   : > { %v1184_v40 = vadd.f32 %v1111_v36, %v940_v19  ;;  %v752_v7 = vrot.slane %v629_v8, 2  ;;  %v508_v42 = vsel %vm440_vm0, %v506_v35, %v507_v59  ;;  %v1234_v25 = vmul.f32 %v3735_v57, %v2743_v15  ;;  %v3854_v8 = vld [vmem:[%s2721_s21 + $0x178] sm:$0xff] }
 0x132   : > { %v1112_v63 = vrot.slane %v990_v53, 1  ;;  %v1235_v1 = vmul.f32 %v3739_v21, %v2743_v15  ;;  %2102 = vst [vmem:[%s2863_s26 + $0xc0] sm:$0xff] %v2070_v58  ;;  %v579_v9 = vadd.f32 %v508_v42, %v334_v56  ;;  %v1113_v30 = vrot.slane %v991_v6, 1 }
 0x133   : > { %v1428_v0 = vadd.f32 %v1355_v26, %v1184_v40  ;;  %v753_v41 = vsel %vm685_vm1, %v751_v44, %v752_v7  ;;  %v1716_v18 = vsel %vm440_vm0, %v1713_v2, %v1715_v50  ;;  %v1356_v39 = vrot.slane %v1234_v25, 2 }
 0x134   : > { %v1357_v55 = vrot.slane %v1235_v1, 2  ;;  %v1595_v60 = vmul.f32 %v3814_v29, %v2756_v22  ;;  %v1960_v5 = vsel %vm685_vm1, %v1957_v32, %v1959_v4  ;;  %v824_v52 = vadd.f32 %v753_v41, %v579_v9 }
 0x135   : > { %v1545_v34 = vadd.f32 %v1513_v33, %v1428_v0  ;;  %v3825_v3 = vmul.f32 %v3818_v46, %v2756_v22  ;;  %v1114_v24 = vsel %vm440_vm0, %v1112_v63, %v1113_v30  ;;  %v1839_v2 = vmul.f32 %v3814_v29, %v2786_v49 }
 0x136   : > { %v1717_v31 = vrot.slane %v1595_v60, 1  ;;  %v3832_v17 = vmul.f32 %v3818_v46, %v2786_v49  ;;  %v941_v23 = vadd.f32 %v909_v54, %v824_v52  ;;  %v1514_v32 = vmul.f32 %v3814_v29, %v2745_v16 }
 0x137   : > { %v1789_v38 = vadd.f32 %v1716_v18, %v1545_v34  ;;  %v1718_v47 = vrot.slane %v3825_v3, 1  ;;  %v1358_v36 = vsel %vm685_vm1, %v1356_v39, %v1357_v55  ;;  %v335_v33 = vmul.f32 %v3660_v20, %v2733_v10 }
 0x138   : > { %v385_v27 = vmul.f32 %v3696_v45, %v2735_v11  ;;  %v630_v51 = vmul.f32 %v3696_v45, %v2737_v12  ;;  %v1185_v50 = vadd.f32 %v1114_v24, %v941_v23  ;;  %v1961_v56 = vrot.slane %v1839_v2, 2 }
 0x139   : > { %v2033_v61 = vadd.f32 %v1960_v5, %v1789_v38  ;;  %v1962_v26 = vrot.slane %v3832_v17, 2  ;;  %v1719_v43 = vsel %vm440_vm0, %v1717_v31, %v1718_v47  ;;  %v992_v37 = vmul.f32 %v3775_v28, %v2741_v14 }
 0x13a   : > { %v509_v35 = vrot.slane %v385_v27, 1  ;;  %v754_v62 = vrot.slane %v630_v51, 2  ;;  %v1429_v19 = vadd.f32 %v1358_v36, %v1185_v50  ;;  %v910_v4 = vmul.f32 %v3739_v21, %v2739_v13 }
 0x13b   : > { %v2071_v20 = vadd.f32 %v3404_v48, %v2033_v61  ;;  %v1236_v45 = vmul.f32 %v3775_v28, %v2743_v15  ;;  %v1115_v53 = vrot.slane %v992_v37, 1  ;;  %v1597_v58 = vmul.f32 %v3854_v8, %v2756_v22 }
 0x13c   : > { %v510_v44 = vsel %vm440_vm0, %v507_v59, %v509_v35  ;;  %v755_v54 = vsel %vm685_vm1, %v752_v7, %v754_v62  ;;  %v1546_v40 = vadd.f32 %v1514_v32, %v1429_v19  ;;  %v1841_v63 = vmul.f32 %v3854_v8, %v2786_v49  ;;  %v3893_v35 = vld [vmem:[%s2721_s21 + $0x180] sm:$0xff]  ;;  %v3897_v19 = vld [vmem:[%s2721_s21 + $0x188] sm:$0xff] }
 0x13d   : > { %2103 = vst [vmem:[%s2863_s26 + $0xc8] sm:$0xff] %v2071_v20  ;;  %v580_v6 = vadd.f32 %v510_v44, %v335_v33  ;;  %v1359_v42 = vrot.slane %v1236_v45, 2  ;;  %v1963_v25 = vsel %vm685_vm1, %v1961_v56, %v1962_v26  ;;  %v1116_v1 = vsel %vm440_vm0, %v1113_v30, %v1115_v53 }
 0x13e   : > { %v1515_v59 = vmul.f32 %v3818_v46, %v2745_v16  ;;  %v386_v7 = vmul.f32 %v3735_v57, %v2735_v11  ;;  %v1790_v0 = vadd.f32 %v1719_v43, %v1546_v40  ;;  %v1720_v41 = vrot.slane %v1597_v58, 1 }
 0x13f   : > { %v825_v9 = vadd.f32 %v755_v54, %v580_v6  ;;  %v336_v18 = vmul.f32 %v3735_v57, %v2733_v10  ;;  %v1360_v39 = vsel %vm685_vm1, %v1357_v55, %v1359_v42  ;;  %v387_v60 = vmul.f32 %v3739_v21, %v2735_v11 }
 0x140   : > { %v511_v34 = vrot.slane %v386_v7, 1  ;;  %v631_v30 = vmul.f32 %v3735_v57, %v2737_v12  ;;  %v2034_v5 = vadd.f32 %v1963_v25, %v1790_v0  ;;  %v1964_v3 = vrot.slane %v1841_v63, 2 }
 0x141   : > { %v942_v52 = vadd.f32 %v910_v4, %v825_v9  ;;  %v632_v24 = vmul.f32 %v3739_v21, %v2737_v12  ;;  %v512_v31 = vrot.slane %v387_v60, 1  ;;  %v911_v55 = vmul.f32 %v3814_v29, %v2739_v13 }
 0x142   : > { %v756_v2 = vrot.slane %v631_v30, 2  ;;  %v993_v17 = vmul.f32 %v3814_v29, %v2741_v14  ;;  %v2072_v38 = vadd.f32 %v3404_v48, %v2034_v5  ;;  %v994_v32 = vmul.f32 %v3818_v46, %v2741_v14 }
 0x143   : > { %v1186_v23 = vadd.f32 %v1116_v1, %v942_v52  ;;  %v757_v57 = vrot.slane %v632_v24, 2  ;;  %v513_v36 = vsel %vm440_vm0, %v511_v34, %v512_v31  ;;  %v1237_v27 = vmul.f32 %v3814_v29, %v2743_v15  ;;  %v3935_v24 = vld [vmem:[%s2721_s21 + $0x190] sm:$0xff] }
 0x144   : > { %v1117_v33 = vrot.slane %v993_v17, 1  ;;  %v1238_v51 = vmul.f32 %v3818_v46, %v2743_v15  ;;  %2104 = vst [vmem:[%s2863_s26 + $0xd0] sm:$0xff] %v2072_v38  ;;  %v581_v50 = vadd.f32 %v513_v36, %v336_v18  ;;  %v1118_v43 = vrot.slane %v994_v32, 1 }
 0x145   : > { %v1430_v61 = vadd.f32 %v1360_v39, %v1186_v23  ;;  %v758_v56 = vsel %vm685_vm1, %v756_v2, %v757_v57  ;;  %v1721_v62 = vsel %vm440_vm0, %v1718_v47, %v1720_v41  ;;  %v1361_v37 = vrot.slane %v1237_v27, 2 }
 0x146   : > { %v1362_v20 = vrot.slane %v1238_v51, 2  ;;  %v1598_v4 = vmul.f32 %v3893_v35, %v2756_v22  ;;  %v1965_v44 = vsel %vm685_vm1, %v1962_v26, %v1964_v3  ;;  %v826_v54 = vadd.f32 %v758_v56, %v581_v50 }
 0x147   : > { %v1547_v45 = vadd.f32 %v1515_v59, %v1430_v61  ;;  %v3904_v53 = vmul.f32 %v3897_v19, %v2756_v22  ;;  %v1119_v58 = vsel %vm440_vm0, %v1117_v33, %v1118_v43  ;;  %v1842_v47 = vmul.f32 %v3893_v35, %v2786_v49 }
 0x148   : > { %v1722_v40 = vrot.slane %v1598_v4, 1  ;;  %v3911_v6 = vmul.f32 %v3897_v19, %v2786_v49  ;;  %v943_v63 = vadd.f32 %v911_v55, %v826_v54  ;;  %v1516_v26 = vmul.f32 %v3893_v35, %v2745_v16 }
 0x149   : > { %v1791_v42 = vadd.f32 %v1721_v62, %v1547_v45  ;;  %v1723_v25 = vrot.slane %v3904_v53, 1  ;;  %v1363_v1 = vsel %vm685_vm1, %v1361_v37, %v1362_v20  ;;  %v337_v59 = vmul.f32 %v3739_v21, %v2733_v10 }
 0x14a   : > { %v388_v7 = vmul.f32 %v3775_v28, %v2735_v11  ;;  %v633_v0 = vmul.f32 %v3775_v28, %v2737_v12  ;;  %v1187_v41 = vadd.f32 %v1119_v58, %v943_v63  ;;  %v1966_v18 = vrot.slane %v1842_v47, 2 }
 0x14b   : > { %v2035_v9 = vadd.f32 %v1965_v44, %v1791_v42  ;;  %v1967_v39 = vrot.slane %v3911_v6, 2  ;;  %v1724_v60 = vsel %vm440_vm0, %v1722_v40, %v1723_v25  ;;  %v995_v21 = vmul.f32 %v3854_v8, %v2741_v14 }
 0x14c   : > { %v514_v34 = vrot.slane %v388_v7, 1  ;;  %v759_v30 = vrot.slane %v633_v0, 2  ;;  %v1431_v52 = vadd.f32 %v1363_v1, %v1187_v41  ;;  %v912_v28 = vmul.f32 %v3818_v46, %v2739_v13  ;;  %v2345_v7 = vld [vmem:[%s2721_s21 + $0x198] sm:$0xff] }
 0x14d   : > { %v2073_v5 = vadd.f32 %v3404_v48, %v2035_v9  ;;  %v1239_v3 = vmul.f32 %v3854_v8, %v2743_v15  ;;  %v1120_v17 = vrot.slane %v995_v21, 1  ;;  %v1600_v38 = vmul.f32 %v3935_v24, %v2756_v22 }
 0x14e   : > { %v515_v2 = vsel %vm440_vm0, %v512_v31, %v514_v34  ;;  %v760_v55 = vsel %vm685_vm1, %v757_v57, %v759_v30  ;;  %v1548_v23 = vadd.f32 %v1516_v26, %v1431_v52  ;;  %v1844_v36 = vmul.f32 %v3935_v24, %v2786_v49 }
 0x14f   : > { %2105 = vst [vmem:[%s2863_s26 + $0xd8] sm:$0xff] %v2073_v5  ;;  %v582_v48 = vadd.f32 %v515_v2, %v337_v59  ;;  %v1364_v32 = vrot.slane %v1239_v3, 2  ;;  %v1968_v33 = vsel %vm685_vm1, %v1966_v18, %v1967_v39  ;;  %v1121_v27 = vsel %vm440_vm0, %v1118_v43, %v1120_v17 }
 0x150   : > { %v1517_v31 = vmul.f32 %v3897_v19, %v2745_v16  ;;  %v389_v57 = vmul.f32 %v3814_v29, %v2735_v11  ;;  %v1792_v51 = vadd.f32 %v1724_v60, %v1548_v23  ;;  %v1725_v50 = vrot.slane %v1600_v38, 1  ;;  %v2346_v60 = vld [vmem:[%s2721_s21 + $0x1a0] sm:$0xff] }
 0x151   : > { %v827_v61 = vadd.f32 %v760_v55, %v582_v48  ;;  %v338_v56 = vmul.f32 %v3814_v29, %v2733_v10  ;;  %v1365_v62 = vsel %vm685_vm1, %v1362_v20, %v1364_v32  ;;  %v390_v37 = vmul.f32 %v3818_v46, %v2735_v11 }
 0x152   : > { %v516_v4 = vrot.slane %v389_v57, 1  ;;  %v634_v43 = vmul.f32 %v3814_v29, %v2737_v12  ;;  %v2036_v45 = vadd.f32 %v1968_v33, %v1792_v51  ;;  %v1969_v54 = vrot.slane %v1844_v36, 2  ;;  %v3968_v29 = vld [vmem:[%s4082_s2] ss:$0 sm:$0xff] }
 0x153   : > { %v944_v44 = vadd.f32 %v912_v28, %v827_v61  ;;  %v635_v58 = vmul.f32 %v3818_v46, %v2737_v12  ;;  %v517_v40 = vrot.slane %v390_v37, 1  ;;  %v913_v20 = vmul.f32 %v3893_v35, %v2739_v13 }
 0x154   : > { %v761_v47 = vrot.slane %v634_v43, 2  ;;  %v996_v42 = vmul.f32 %v3893_v35, %v2741_v14  ;;  %v2074_v63 = vadd.f32 %v3968_v29, %v2036_v45  ;;  %v997_v59 = vmul.f32 %v3897_v19, %v2741_v14 }
 0x155   : > { %v1188_v26 = vadd.f32 %v1121_v27, %v944_v44  ;;  %v762_v1 = vrot.slane %v635_v58, 2  ;;  %v518_v0 = vsel %vm440_vm0, %v516_v4, %v517_v40  ;;  %v1240_v41 = vmul.f32 %v3893_v35, %v2743_v15 }
 0x156   : > { %v1122_v9 = vrot.slane %v996_v42, 1  ;;  %v1241_v18 = vmul.f32 %v3897_v19, %v2743_v15  ;;  %2106 = vst [vmem:[%s2863_s26 + $0xe0] sm:$0xff] %v2074_v63  ;;  %v583_v30 = vadd.f32 %v518_v0, %v338_v56  ;;  %v1123_v5 = vrot.slane %v997_v59, 1 }
 0x157   : > { %v1432_v34 = vadd.f32 %v1365_v62, %v1188_v26  ;;  %v763_v21 = vsel %vm685_vm1, %v761_v47, %v762_v1  ;;  %v1726_v52 = vsel %vm440_vm0, %v1723_v25, %v1725_v50  ;;  %v1366_v28 = vrot.slane %v1240_v41, 2 }
 0x158   : > { %v1367_v3 = vrot.slane %v1241_v18, 2  ;;  %v1601_v2 = vmul.f32 %v2345_v7, %v2756_v22  ;;  %v828_v35 = vadd.f32 %v763_v21, %v583_v30  ;;  %v1602_v17 = vmul.f32 %v2346_v60, %v2756_v22 }
 0x159   : > { %v1549_v55 = vadd.f32 %v1517_v31, %v1432_v34  ;;  %v1970_v38 = vsel %vm685_vm1, %v1967_v39, %v1969_v54  ;;  %v1124_v23 = vsel %vm440_vm0, %v1122_v9, %v1123_v5  ;;  %v1845_v48 = vmul.f32 %v2345_v7, %v2786_v49 }
 0x15a   : > { %v1846_v53 = vmul.f32 %v2346_v60, %v2786_v49  ;;  %v945_v25 = vadd.f32 %v913_v20, %v828_v35  ;;  %v1368_v36 = vsel %vm685_vm1, %v1366_v28, %v1367_v3  ;;  %v1518_v33 = vmul.f32 %v2345_v7, %v2745_v16 }
 0x15b   : > { %v1793_v32 = vadd.f32 %v1726_v52, %v1549_v55  ;;  %v1727_v27 = vrot.slane %v1601_v2, 1  ;;  %v1728_v31 = vrot.slane %v1602_v17, 1  ;;  %v391_v6 = vmul.f32 %v3854_v8, %v2735_v11 }
 0x15c   : > { %v636_v39 = vmul.f32 %v3854_v8, %v2737_v12  ;;  %v1189_v51 = vadd.f32 %v1124_v23, %v945_v25  ;;  %v1971_v61 = vrot.slane %v1845_v48, 2  ;;  %v339_v50 = vmul.f32 %v3818_v46, %v2733_v10  ;;  %v2347_v12 = vld [vmem:[%s2721_s21 + $0x1a8] sm:$0xff]  ;;  %s2497_s21 = sshll.u32 %s2585_s15, 4  ;;  %s2498_s21 = int_to_ptr.vmem [resolvable:$false] %s2497_s21 }
 0x15d   : > { %v2037_v57 = vadd.f32 %v1970_v38, %v1793_v32  ;;  %v1972_v56 = vrot.slane %v1846_v53, 2  ;;  %v519_v62 = vrot.slane %v391_v6, 1  ;;  %v998_v4 = vmul.f32 %v3935_v24, %v2741_v14  ;;  %s2499_s20 = scalar_lea.vmem %s2498_s21, 8192  ;;  %p2500_p2 = scmp.lt.s32.totalorder %s4030_s7, %s2498_s21 }
 0x15e   : > { %v764_v37 = vrot.slane %v636_v39, 2  ;;  %v1433_v45 = vadd.f32 %v1368_v36, %v1189_v51  ;;  %v1242_v11 = vmul.f32 %v3935_v24, %v2743_v15  ;;  %v1729_v8 = vsel %vm440_vm0, %v1727_v27, %v1728_v31  ;;  %p2501_p5 = scmp.lt.s32.totalorder %s2499_s20, %s2493_s29 }
 0x15f   : > { %v2075_v43 = vadd.f32 %v3968_v29, %v2037_v57  ;;  %v520_v44 = vsel %vm440_vm0, %v517_v40, %v519_v62  ;;  %v1125_v10 = vrot.slane %v998_v4, 1  ;;  %v914_v14 = vmul.f32 %v3897_v19, %v2739_v13 }
 0x160   : > { %v765_v54 = vsel %vm685_vm1, %v762_v1, %v764_v37  ;;  %v1550_v46 = vadd.f32 %v1518_v33, %v1433_v45  ;;  %v584_v58 = vadd.f32 %v520_v44, %v339_v50  ;;  %v1973_v47 = vsel %vm685_vm1, %v1971_v61, %v1972_v56  ;;  %p2502_p7 = por %p2501_p5, %p2500_p2 }
 0x161   : > { %2107 = vst [vmem:[%s2863_s26 + $0xe8] sm:$0xff] %v2075_v43  ;;  %v1369_v20 = vrot.slane %v1242_v11, 2  ;;  %v1603_v15 = vmul.f32 %v2347_v12, %v2756_v22  ;;  %v1126_v63 = vsel %vm440_vm0, %v1123_v5, %v1125_v10  ;;  %v1847_v40 = vmul.f32 %v2347_v12, %v2786_v49 }
 0x162   : > { %v1794_v24 = vadd.f32 %v1729_v8, %v1550_v46  ;;  %v829_v42 = vadd.f32 %v765_v54, %v584_v58  ;;  %v1519_v22 = vmul.f32 %v2346_v60, %v2745_v16  ;;  %p2503_p6 = pnand %p2502_p7, %p2496_p11 }
 0x163   : > { %v1370_v59 = vsel %vm685_vm1, %v1367_v3, %v1369_v20  ;;  %v1730_v7 = vrot.slane %v1603_v15, 1  ;;  %v1974_v0 = vrot.slane %v1847_v40, 2 }
 0x164   : > { %v2038_v26 = vadd.f32 %v1973_v47, %v1794_v24  ;;  %v946_v1 = vadd.f32 %v914_v14, %v829_v42 }
 0x165   : > { %v1731_v41 = vsel %vm440_vm0, %v1728_v31, %v1730_v7  ;;  %v1975_v18 = vsel %vm685_vm1, %v1972_v56, %v1974_v0 }
 0x166   : > { %v2076_v13 = vadd.f32 %v3968_v29, %v2038_v26  ;;  %v1190_v19 = vadd.f32 %v1126_v63, %v946_v1 }
 0x168   : > { %2108 = vst [vmem:[%s2863_s26 + $0xf0] sm:$0xff] %v2076_v13  ;;  %v1434_v9 = vadd.f32 %v1370_v59, %v1190_v19 }
 0x16a   : > { %v1551_v49 = vadd.f32 %v1519_v22, %v1434_v9 }
 0x16c   : > { %v1795_v34 = vadd.f32 %v1731_v41, %v1551_v49 }
 0x16e   : > { %v2039_v30 = vadd.f32 %v1975_v18, %v1795_v34 }
 0x170   : > { %v2077_v16 = vadd.f32 %v3968_v29, %v2039_v30 }
 0x172   : > { %2109 = vst [vmem:[%s2863_s26 + $0xf8] sm:$0xff] %v2077_v16 }
 0x173   : > { %2506 = shalt.err (!%p2503_p6)
}
 0x174   : > { %s2507_s22 = scalar_lea.hbm %s4028_s19, 4096  ;;  %s2511_s27 = scalar_lea.hbm %s4083_s3, 8192 }
 0x175   : > { %p2508_p4 = scmp.ne.s32.totalorder %s4028_s19, %s2507_s22  ;;  %p2512_p0 = scmp.lt.s32.totalorder %s4028_s19, %s4083_s3 }
 0x176   : > { %p2513_p3 = scmp.lt.s32.totalorder %s2511_s27, %s2507_s22 }
 0x177   : > { %p2509_p9 = pnand %p2508_p4, %p2691_p13 }
 0x178   : > { %p2514_p1 = por %p2513_p3, %p2512_p0 }
 0x179   : > { %p2510_p12 = pneg %p2509_p9 }
 0x17b   : > { %p2515_p8 = pnand %p2514_p1, %p2510_p12 }
 0x17d   : > { %2518 = shalt.err (!%p2515_p8)
}
 0x17e   : > { %s2586_s5 = smov 128   ;;  %s2587_s6 = smov 8  }
 0x17f   : > { %2364 = dma.vmem_to_hbm [thread:$0]  (%p2691_p13), %s4030_s7, 4096, %s4028_s19, %s2111_s25, %s2586_s5, %s2586_s5, %s2587_s6  }
 0x180 PF: > { %s2143_s9 = sand.u32 1, %s2557_s12   ;;  %p4094_p11 = scmp.ne.s32.totalorder %s4088_s23, 0 }
 0x181   : > { %s2144_s11 = scalar_lea.sflag [#allocation4], %s2143_s9 }
 0x182   : > { %p2375_p2 = pnand %p2247_p10, %p4094_p11 }
 0x184   : > { %p2376_p5 = pneg %p2375_p2 }
 0x186   : > { %2552 = dma.done.wait (%p2376_p5), %s2144_s11, 4096  }
 0x187   : > { %2554 = vsyncadd (%p2376_p5), %s2144_s11, 4294963200  ;;  %s20_s17 = sadd.s32 1, %s2577_s17   ;;  %s4095_s12 = smov %s2561_s13 }
 0x188   : > { %p17_p7 = scmp.ge.s32.totalorder %s20_s17, 4   ;;  %s4096_s13 = smov %s2565_s14 }
 0x189   : > { %s4097_s14 = smov %s2700_s18  ;;  %s4098_s15 = smov %s2573_s16 }
 0x18a   : > { %s4099_s16 = smov %s4101_s28  ;;  %19 = sbr.rel (!%p17_p7) target bundleno = 7 (0x7), region = 87 }
 0x18f   :  { %2149 = vsyncpa [#allocation3], 1 }
 0x190   :  { %2151 = vsyncpa [#allocation3 + $0x1], 1 }
 0x191   :  { %2152 = vsyncpa [#allocation6], 1 }
 0x192   :  { %2153 = vsyncpa [#allocation4], 1 }
 0x193   :  { %2155 = vsyncpa [#allocation4 + $0x1], 1 }

</bundles_post_ra>
